<compile_context>
chip_gen: v7x
topology: tpu7x:2x2x1
jax: 0.10.0
libtpu: 0.0.40
codegen_flags: <defaults>
</compile_context>

<pallas_src>
import functools

import jax
import jax.numpy as jnp
from jax import lax
from jax.experimental import pallas as pl
from jax.experimental.pallas import tpu as pltpu


# ---------------------------------------------------------------------------
# Weight / bias re-layout helpers (pure XLA glue, run once per call)
# ---------------------------------------------------------------------------

def _banded_conv_weights(w_oihw, width, dtype):
    """OIHW kxk weights -> (KH, width*C_in, width*C_out) banded matrices.

    Wk[kh][j*C_in + ci, ow*C_out + co] = weight[co, ci, kh, j - ow + pad]
    (zero outside the tap range), which folds the KW taps and the W-direction
    zero padding into a single matmul contraction per kh tap.
    """
    c_out, c_in, kh, kw = w_oihw.shape
    pad = (kw - 1) // 2
    wt = jnp.transpose(w_oihw, (2, 3, 1, 0))              # (KH, KW, C_in, C_out)
    j = jnp.arange(width)[:, None]                        # input column
    ow = jnp.arange(width)[None, :]                       # output column
    rel = j - ow + pad                                     # kw tap index
    valid = ((rel >= 0) & (rel < kw)).astype(w_oihw.dtype)
    rel_c = jnp.clip(rel, 0, kw - 1)
    mats = []
    for k in range(kh):
        m = wt[k][rel_c] * valid[:, :, None, None]         # (W, W, C_in, C_out)
        m = jnp.transpose(m, (0, 2, 1, 3)).reshape(width * c_in, width * c_out)
        mats.append(m)
    return jnp.stack(mats, 0).astype(dtype)                # (KH, W*C_in, W*C_out)


def _blockdiag_1x1_weights(w_oihw, width, dtype):
    """1x1 conv (C_res, 3*C_mid, 1, 1) -> (3, width*C_mid, width*C_res)
    block-diagonal matrices (one per concat branch)."""
    c_res, c3 = w_oihw.shape[0], w_oihw.shape[1]
    c_mid = c3 // 3
    w_mat = w_oihw[:, :, 0, 0].T                           # (3*C_mid, C_res)
    eye = jnp.eye(width, dtype=w_mat.dtype)
    mats = [jnp.kron(eye, w_mat[br * c_mid:(br + 1) * c_mid]) for br in range(3)]
    return jnp.stack(mats, 0).astype(dtype)


def _tiled_bias(b, width):
    """(C,) -> (1, width*C) with bias[ow*C + c] = b[c] (matches row layout)."""
    return jnp.tile(b, width).reshape(1, width * b.shape[0]).astype(jnp.float32)


# ---------------------------------------------------------------------------
# Fused whole-network kernel (one grid step = one batch image)
# ---------------------------------------------------------------------------

def _inception_kernel(x_ref,
                      w1_ref, b1_ref, w20_ref, b20_ref, w21_ref, b21_ref,
                      w30_ref, b30_ref, w31_ref, b31_ref, w32_ref, b32_ref,
                      w4_ref, b4_ref,
                      o_ref,
                      pad_in, pad_mid,
                      *, cdtype):
    h = x_ref.shape[0]
    ksize = w1_ref.shape[0]

    x_f32 = x_ref[...]                                     # (H, W*C_in) f32

    # H-direction zero padding lives in tiny per-image VMEM scratch; the
    # W-direction padding is already folded into the banded weights.
    pad_in[pl.ds(0, 1), :] = jnp.zeros((1, pad_in.shape[1]), pad_in.dtype)
    pad_in[pl.ds(h + 1, 1), :] = jnp.zeros((1, pad_in.shape[1]), pad_in.dtype)
    pad_mid[pl.ds(0, 1), :] = jnp.zeros((1, pad_mid.shape[1]), pad_mid.dtype)
    pad_mid[pl.ds(h + 1, 1), :] = jnp.zeros((1, pad_mid.shape[1]), pad_mid.dtype)
    pad_in[pl.ds(1, h), :] = x_f32

    def conv3x3_relu(pad_ref, wk_ref, b_ref):
        # KH matmuls over full-width row bands; acc is lane-dense (H, W*C_out).
        acc = None
        for k in range(ksize):
            band = pad_ref[pl.ds(k, h), :].astype(cdtype)
            part = jnp.dot(band, wk_ref[k], preferred_element_type=jnp.float32)
            acc = part if acc is None else acc + part
        return jnp.maximum(acc + b_ref[...], 0.0)          # bias + ReLU, f32

    # Branch heads: conv1, conv2[0], conv3[0] share the same padded input.
    x1 = conv3x3_relu(pad_in, w1_ref, b1_ref)
    y2 = conv3x3_relu(pad_in, w20_ref, b20_ref)
    y3 = conv3x3_relu(pad_in, w30_ref, b30_ref)

    # conv2[1]
    pad_mid[pl.ds(1, h), :] = y2
    x2 = conv3x3_relu(pad_mid, w21_ref, b21_ref)

    # conv3[1], conv3[2]
    pad_mid[pl.ds(1, h), :] = y3
    z3 = conv3x3_relu(pad_mid, w31_ref, b31_ref)
    pad_mid[pl.ds(1, h), :] = z3
    x3 = conv3x3_relu(pad_mid, w32_ref, b32_ref)

    # conv4 (1x1 over the channel concat) as block-diagonal matmuls per branch
    # (concat never materialized) + bias + ReLU + residual add.
    acc4 = jnp.dot(x1.astype(cdtype), w4_ref[0],
                   preferred_element_type=jnp.float32)
    acc4 = acc4 + jnp.dot(x2.astype(cdtype), w4_ref[1],
                          preferred_element_type=jnp.float32)
    acc4 = acc4 + jnp.dot(x3.astype(cdtype), w4_ref[2],
                          preferred_element_type=jnp.float32)
    out = jnp.maximum(acc4 + b4_ref[...], 0.0) + x_f32
    # Final store is (H, W*C_in) = (16, 64): half-lane, but it is one tiny
    # 4 KiB store per image -- negligible next to the lane-dense conv work.
    o_ref[...] = out.astype(o_ref.dtype)


# ---------------------------------------------------------------------------
# InceptionResNet forward (NCHW in / NCHW out, matching the PyTorch module)
# ---------------------------------------------------------------------------

@functools.partial(jax.jit, static_argnames=("compute_dtype",))
def inception_resnet_forward(x_nchw, params, compute_dtype=jnp.bfloat16):
    n, c_in, h, w = x_nchw.shape
    c_out = params["conv1"][0].shape[0]
    ksize = params["conv1"][0].shape[-1]
    wcin, wcout = w * c_in, w * c_out

    # Boundary layout change only: NCHW -> lane-dense (N, H, W*C) rows, f32.
    x_rows = jnp.transpose(x_nchw, (0, 2, 3, 1)).reshape(n, h, wcin)
    x_rows = x_rows.astype(jnp.float32)

    def conv_args(name):
        wgt, b = params[name]
        return (_banded_conv_weights(wgt, w, compute_dtype), _tiled_bias(b, w))

    w1, b1 = conv_args("conv1")
    w20, b20 = conv_args("conv2_0")
    w21, b21 = conv_args("conv2_1")
    w30, b30 = conv_args("conv3_0")
    w31, b31 = conv_args("conv3_1")
    w32, b32 = conv_args("conv3_2")
    w4m, b4m = params["conv4"]
    w4 = _blockdiag_1x1_weights(w4m, w, compute_dtype)
    b4 = _tiled_bias(b4m, w)

    kernel = functools.partial(_inception_kernel, cdtype=compute_dtype)

    io_spec = pl.BlockSpec((None, h, wcin), lambda i: (i, 0, 0))
    wk_in_spec = pl.BlockSpec((ksize, wcin, wcout), lambda i: (0, 0, 0))
    wk_mid_spec = pl.BlockSpec((ksize, wcout, wcout), lambda i: (0, 0, 0))
    w4_spec = pl.BlockSpec((3, wcout, wcin), lambda i: (0, 0, 0))
    b_out_spec = pl.BlockSpec((1, wcout), lambda i: (0, 0))
    b_res_spec = pl.BlockSpec((1, wcin), lambda i: (0, 0))

    itemsize = jnp.dtype(compute_dtype).itemsize
    weight_bytes = (3 * ksize * wcin * wcout + 3 * ksize * wcout * wcout
                    + 3 * wcout * wcin) * itemsize
    act_bytes = h * wcin * 4
    scratch_bytes = (h + 2) * (wcin + wcout) * 4
    flops = 2 * n * h * (3 * ksize * wcin * wcout + 3 * ksize * wcout * wcout
                         + 3 * wcout * wcin)
    vmem_need = 4 * (weight_bytes + 2 * act_bytes) + scratch_bytes
    vmem_limit = int(min(max(vmem_need, 8 * 1024 * 1024), 64 * 1024 * 1024))

    out_rows = pl.pallas_call(
        kernel,
        out_shape=jax.ShapeDtypeStruct((n, h, wcin), jnp.float32),
        grid=(n,),
        in_specs=[io_spec,
                  wk_in_spec, b_out_spec,      # conv1
                  wk_in_spec, b_out_spec,      # conv2[0]
                  wk_mid_spec, b_out_spec,     # conv2[1]
                  wk_in_spec, b_out_spec,      # conv3[0]
                  wk_mid_spec, b_out_spec,     # conv3[1]
                  wk_mid_spec, b_out_spec,     # conv3[2]
                  w4_spec, b_res_spec],        # conv4
        out_specs=io_spec,
        scratch_shapes=[pltpu.VMEM((h + 2, wcin), jnp.float32),
                        pltpu.VMEM((h + 2, wcout), jnp.float32)],
        compiler_params=pltpu.CompilerParams(
            dimension_semantics=("parallel",),
            vmem_limit_bytes=vmem_limit),
        cost_estimate=pl.CostEstimate(
            flops=flops, transcendentals=0,
            bytes_accessed=n * 2 * act_bytes + weight_bytes),
    )(x_rows, w1, b1, w20, b20, w21, b21, w30, b30, w31, b31, w32, b32, w4, b4)

    return jnp.transpose(out_rows.reshape(n, h, w, c_in), (0, 3, 1, 2))


# ---------------------------------------------------------------------------
# Pure-XLA reference mirroring the kernel numerics
# ---------------------------------------------------------------------------

def _ref_inception_resnet(x_nchw, params, compute_dtype):
    def conv(x, name, pad):
        w, b = params[name]
        y = lax.conv_general_dilated(
            x.astype(compute_dtype), w.astype(compute_dtype),
            window_strides=(1, 1), padding=((pad, pad), (pad, pad)),
            dimension_numbers=("NCHW", "OIHW", "NCHW"),
            preferred_element_type=jnp.float32,
            precision=lax.Precision.HIGHEST)
        return jnp.maximum(y + b[None, :, None, None], 0.0)

    x1 = conv(x_nchw, "conv1", 1)
    x2 = conv(conv(x_nchw, "conv2_0", 1), "conv2_1", 1)
    x3 = conv(conv(conv(x_nchw, "conv3_0", 1), "conv3_1", 1), "conv3_2", 1)
    x123 = jnp.concatenate([x1, x2, x3], axis=1)
    x4 = conv(x123, "conv4", 0)
    return x4 + x_nchw


if __name__ == "__main__":
    N, C_IN, C_OUT, H, W = 2, 4, 8, 16, 16

    key = jax.random.PRNGKey(0)
    k_x, *k_params = jax.random.split(key, 8)

    def init_conv(k, c_out, c_in, ksize):
        kw_, kb_ = jax.random.split(k)
        w = jax.random.normal(kw_, (c_out, c_in, ksize, ksize),
                              jnp.float32) * 0.1
        b = jax.random.normal(kb_, (c_out,), jnp.float32) * 0.1
        return w, b

    x = jax.random.normal(k_x, (N, C_IN, H, W), jnp.float32)
    params = {
        "conv1":   init_conv(k_params[0], C_OUT, C_IN, 3),
        "conv2_0": init_conv(k_params[1], C_OUT, C_IN, 3),
        "conv2_1": init_conv(k_params[2], C_OUT, C_OUT, 3),
        "conv3_0": init_conv(k_params[3], C_OUT, C_IN, 3),
        "conv3_1": init_conv(k_params[4], C_OUT, C_OUT, 3),
        "conv3_2": init_conv(k_params[5], C_OUT, C_OUT, 3),
        "conv4":   init_conv(k_params[6], C_IN, 3 * C_OUT, 1),
    }

    # 1) f32 mode: structural check against the high-precision XLA reference.
    out_f32 = jax.block_until_ready(
        inception_resnet_forward(x, params, compute_dtype=jnp.float32))
    assert out_f32.shape == (N, C_IN, H, W), out_f32.shape
    ref_f32 = _ref_inception_resnet(x, params, jnp.float32)
    err_f32 = float(jnp.max(jnp.abs(out_f32 - ref_f32)))
    assert err_f32 < 2e-2, err_f32   # generous: allows MXU f32 pass rounding

    # 2) bf16-MXU mode (the performance default): compare against a reference
    #    with the same operand precision (bf16 operands, f32 accumulation).
    out_bf16 = jax.block_until_ready(inception_resnet_forward(x, params))
    ref_bf16 = _ref_inception_resnet(x, params, jnp.bfloat16)
    err_bf16 = float(jnp.max(jnp.abs(out_bf16 - ref_bf16)))
    assert err_bf16 < 1e-1, err_bf16

    print("KERNEL_OK")
</pallas_src>

<mosaic_0001>
module attributes {stable_mosaic.version = 11 : i64} {
  func.func @_inception_kernel(%arg0: i32, %arg1: memref<1x16x64xf32, #tpu.memory_space<vmem>>, %arg2: memref<3x64x128xf32, #tpu.memory_space<vmem>>, %arg3: memref<1x128xf32, #tpu.memory_space<vmem>>, %arg4: memref<3x64x128xf32, #tpu.memory_space<vmem>>, %arg5: memref<1x128xf32, #tpu.memory_space<vmem>>, %arg6: memref<3x128x128xf32, #tpu.memory_space<vmem>>, %arg7: memref<1x128xf32, #tpu.memory_space<vmem>>, %arg8: memref<3x64x128xf32, #tpu.memory_space<vmem>>, %arg9: memref<1x128xf32, #tpu.memory_space<vmem>>, %arg10: memref<3x128x128xf32, #tpu.memory_space<vmem>>, %arg11: memref<1x128xf32, #tpu.memory_space<vmem>>, %arg12: memref<3x128x128xf32, #tpu.memory_space<vmem>>, %arg13: memref<1x128xf32, #tpu.memory_space<vmem>>, %arg14: memref<3x128x64xf32, #tpu.memory_space<vmem>>, %arg15: memref<1x64xf32, #tpu.memory_space<vmem>>, %arg16: memref<1x16x64xf32, #tpu.memory_space<vmem>>, %arg17: memref<18x64xf32, #tpu.memory_space<vmem>>, %arg18: memref<18x128xf32, #tpu.memory_space<vmem>>) attributes {dimension_semantics = [#tpu.dimension_semantics<parallel>], iteration_bounds = array<i64: 2>, scalar_prefetch = 0 : i64, scratch_operands = 2 : i64, tpu.core_type = #tpu.core_type<tc>, window_params = [{transform_indices = @transform_0, window_bounds = array<i64: 1, 16, 64>}, {pipeline_mode = #tpu.pipeline_mode<synchronous>, transform_indices = @transform_1, window_bounds = array<i64: 3, 64, 128>}, {pipeline_mode = #tpu.pipeline_mode<synchronous>, transform_indices = @transform_2, window_bounds = array<i64: 1, 128>}, {pipeline_mode = #tpu.pipeline_mode<synchronous>, transform_indices = @transform_3, window_bounds = array<i64: 3, 64, 128>}, {pipeline_mode = #tpu.pipeline_mode<synchronous>, transform_indices = @transform_4, window_bounds = array<i64: 1, 128>}, {pipeline_mode = #tpu.pipeline_mode<synchronous>, transform_indices = @transform_5, window_bounds = array<i64: 3, 128, 128>}, {pipeline_mode = #tpu.pipeline_mode<synchronous>, transform_indices = @transform_6, window_bounds = array<i64: 1, 128>}, {pipeline_mode = #tpu.pipeline_mode<synchronous>, transform_indices = @transform_7, window_bounds = array<i64: 3, 64, 128>}, {pipeline_mode = #tpu.pipeline_mode<synchronous>, transform_indices = @transform_8, window_bounds = array<i64: 1, 128>}, {pipeline_mode = #tpu.pipeline_mode<synchronous>, transform_indices = @transform_9, window_bounds = array<i64: 3, 128, 128>}, {pipeline_mode = #tpu.pipeline_mode<synchronous>, transform_indices = @transform_10, window_bounds = array<i64: 1, 128>}, {pipeline_mode = #tpu.pipeline_mode<synchronous>, transform_indices = @transform_11, window_bounds = array<i64: 3, 128, 128>}, {pipeline_mode = #tpu.pipeline_mode<synchronous>, transform_indices = @transform_12, window_bounds = array<i64: 1, 128>}, {pipeline_mode = #tpu.pipeline_mode<synchronous>, transform_indices = @transform_13, window_bounds = array<i64: 3, 128, 64>}, {pipeline_mode = #tpu.pipeline_mode<synchronous>, transform_indices = @transform_14, window_bounds = array<i64: 1, 64>}, {transform_indices = @transform_15, window_bounds = array<i64: 1, 16, 64>}]} {
    %c0 = arith.constant 0 : index
    %c0_0 = arith.constant 0 : index
    %c0_1 = arith.constant 0 : index
    %0 = vector.load %arg1[%c0, %c0_0, %c0_1] : memref<1x16x64xf32, #tpu.memory_space<vmem>>, vector<1x16x64xf32>
    %1 = vector.shape_cast %0 : vector<1x16x64xf32> to vector<16x64xf32>
    %cst = arith.constant 0.000000e+00 : f32
    %2 = vector.broadcast %cst : f32 to vector<1x64xf32>
    %c0_2 = arith.constant 0 : index
    %c0_3 = arith.constant 0 : index
    %3 = vector.load %arg17[%c0_2, %c0_3] : memref<18x64xf32, #tpu.memory_space<vmem>>, vector<1x64xf32>
    tpu.vector_store %arg17[%c0_2, %c0_3], %2 {strides = array<i32>} : memref<18x64xf32, #tpu.memory_space<vmem>>, vector<1x64xf32>,
    %cst_4 = arith.constant 0.000000e+00 : f32
    %4 = vector.broadcast %cst_4 : f32 to vector<1x64xf32>
    %c17 = arith.constant 17 : index
    %c0_5 = arith.constant 0 : index
    %5 = vector.load %arg17[%c17, %c0_5] : memref<18x64xf32, #tpu.memory_space<vmem>>, vector<1x64xf32>
    tpu.vector_store %arg17[%c17, %c0_5], %4 {strides = array<i32>} : memref<18x64xf32, #tpu.memory_space<vmem>>, vector<1x64xf32>,
    %cst_6 = arith.constant 0.000000e+00 : f32
    %6 = vector.broadcast %cst_6 : f32 to vector<1x128xf32>
    %c0_7 = arith.constant 0 : index
    %c0_8 = arith.constant 0 : index
    %7 = vector.load %arg18[%c0_7, %c0_8] : memref<18x128xf32, #tpu.memory_space<vmem>>, vector<1x128xf32>
    tpu.vector_store %arg18[%c0_7, %c0_8], %6 {strides = array<i32>} : memref<18x128xf32, #tpu.memory_space<vmem>>, vector<1x128xf32>,
    %cst_9 = arith.constant 0.000000e+00 : f32
    %8 = vector.broadcast %cst_9 : f32 to vector<1x128xf32>
    %c17_10 = arith.constant 17 : index
    %c0_11 = arith.constant 0 : index
    %9 = vector.load %arg18[%c17_10, %c0_11] : memref<18x128xf32, #tpu.memory_space<vmem>>, vector<1x128xf32>
    tpu.vector_store %arg18[%c17_10, %c0_11], %8 {strides = array<i32>} : memref<18x128xf32, #tpu.memory_space<vmem>>, vector<1x128xf32>,
    %c1 = arith.constant 1 : index
    %c0_12 = arith.constant 0 : index
    %10 = vector.load %arg17[%c1, %c0_12] : memref<18x64xf32, #tpu.memory_space<vmem>>, vector<16x64xf32>
    tpu.vector_store %arg17[%c1, %c0_12], %1 {strides = array<i32>} : memref<18x64xf32, #tpu.memory_space<vmem>>, vector<16x64xf32>,
    %c0_13 = arith.constant 0 : index
    %c0_14 = arith.constant 0 : index
    %11 = vector.load %arg17[%c0_13, %c0_14] : memref<18x64xf32, #tpu.memory_space<vmem>>, vector<16x64xf32>
    %c0_15 = arith.constant 0 : index
    %c0_16 = arith.constant 0 : index
    %c0_17 = arith.constant 0 : index
    %12 = vector.load %arg2[%c0_15, %c0_16, %c0_17] : memref<3x64x128xf32, #tpu.memory_space<vmem>>, vector<1x64x128xf32>
    %13 = vector.shape_cast %12 : vector<1x64x128xf32> to vector<64x128xf32>
    %cst_18 = arith.constant dense<0.000000e+00> : vector<16x128xf32>
    %14 = tpu.matmul %11, %13, %cst_18 {dimension_numbers = #tpu.dot_dimension_numbers<[1], [0], [0], [1], [0, 0, 1, 1], [], []>} : vector<16x64xf32>, vector<64x128xf32>, vector<16x128xf32> -> vector<16x128xf32>
    %c1_19 = arith.constant 1 : index
    %c0_20 = arith.constant 0 : index
    %15 = vector.load %arg17[%c1_19, %c0_20] : memref<18x64xf32, #tpu.memory_space<vmem>>, vector<16x64xf32>
    %c1_21 = arith.constant 1 : index
    %c0_22 = arith.constant 0 : index
    %c0_23 = arith.constant 0 : index
    %16 = vector.load %arg2[%c1_21, %c0_22, %c0_23] : memref<3x64x128xf32, #tpu.memory_space<vmem>>, vector<1x64x128xf32>
    %17 = vector.shape_cast %16 : vector<1x64x128xf32> to vector<64x128xf32>
    %cst_24 = arith.constant dense<0.000000e+00> : vector<16x128xf32>
    %18 = tpu.matmul %15, %17, %cst_24 {dimension_numbers = #tpu.dot_dimension_numbers<[1], [0], [0], [1], [0, 0, 1, 1], [], []>} : vector<16x64xf32>, vector<64x128xf32>, vector<16x128xf32> -> vector<16x128xf32>
    %19 = arith.addf %14, %18 : vector<16x128xf32>
    %c2 = arith.constant 2 : index
    %c0_25 = arith.constant 0 : index
    %20 = vector.load %arg17[%c2, %c0_25] : memref<18x64xf32, #tpu.memory_space<vmem>>, vector<16x64xf32>
    %c2_26 = arith.constant 2 : index
    %c0_27 = arith.constant 0 : index
    %c0_28 = arith.constant 0 : index
    %21 = vector.load %arg2[%c2_26, %c0_27, %c0_28] : memref<3x64x128xf32, #tpu.memory_space<vmem>>, vector<1x64x128xf32>
    %22 = vector.shape_cast %21 : vector<1x64x128xf32> to vector<64x128xf32>
    %cst_29 = arith.constant dense<0.000000e+00> : vector<16x128xf32>
    %23 = tpu.matmul %20, %22, %cst_29 {dimension_numbers = #tpu.dot_dimension_numbers<[1], [0], [0], [1], [0, 0, 1, 1], [], []>} : vector<16x64xf32>, vector<64x128xf32>, vector<16x128xf32> -> vector<16x128xf32>
    %24 = arith.addf %19, %23 : vector<16x128xf32>
    %c0_30 = arith.constant 0 : index
    %c0_31 = arith.constant 0 : index
    %25 = vector.load %arg3[%c0_30, %c0_31] : memref<1x128xf32, #tpu.memory_space<vmem>>, vector<1x128xf32>
    %26 = vector.broadcast %25 : vector<1x128xf32> to vector<16x128xf32>
    %27 = arith.addf %24, %26 : vector<16x128xf32>
    %cst_32 = arith.constant 0.000000e+00 : f32
    %28 = vector.broadcast %cst_32 : f32 to vector<16x128xf32>
    %29 = arith.maximumf %27, %28 : vector<16x128xf32>
    %c0_33 = arith.constant 0 : index
    %c0_34 = arith.constant 0 : index
    %30 = vector.load %arg17[%c0_33, %c0_34] : memref<18x64xf32, #tpu.memory_space<vmem>>, vector<16x64xf32>
    %c0_35 = arith.constant 0 : index
    %c0_36 = arith.constant 0 : index
    %c0_37 = arith.constant 0 : index
    %31 = vector.load %arg4[%c0_35, %c0_36, %c0_37] : memref<3x64x128xf32, #tpu.memory_space<vmem>>, vector<1x64x128xf32>
    %32 = vector.shape_cast %31 : vector<1x64x128xf32> to vector<64x128xf32>
    %cst_38 = arith.constant dense<0.000000e+00> : vector<16x128xf32>
    %33 = tpu.matmul %30, %32, %cst_38 {dimension_numbers = #tpu.dot_dimension_numbers<[1], [0], [0], [1], [0, 0, 1, 1], [], []>} : vector<16x64xf32>, vector<64x128xf32>, vector<16x128xf32> -> vector<16x128xf32>
    %c1_39 = arith.constant 1 : index
    %c0_40 = arith.constant 0 : index
    %34 = vector.load %arg17[%c1_39, %c0_40] : memref<18x64xf32, #tpu.memory_space<vmem>>, vector<16x64xf32>
    %c1_41 = arith.constant 1 : index
    %c0_42 = arith.constant 0 : index
    %c0_43 = arith.constant 0 : index
    %35 = vector.load %arg4[%c1_41, %c0_42, %c0_43] : memref<3x64x128xf32, #tpu.memory_space<vmem>>, vector<1x64x128xf32>
    %36 = vector.shape_cast %35 : vector<1x64x128xf32> to vector<64x128xf32>
    %cst_44 = arith.constant dense<0.000000e+00> : vector<16x128xf32>
    %37 = tpu.matmul %34, %36, %cst_44 {dimension_numbers = #tpu.dot_dimension_numbers<[1], [0], [0], [1], [0, 0, 1, 1], [], []>} : vector<16x64xf32>, vector<64x128xf32>, vector<16x128xf32> -> vector<16x128xf32>
    %38 = arith.addf %33, %37 : vector<16x128xf32>
    %c2_45 = arith.constant 2 : index
    %c0_46 = arith.constant 0 : index
    %39 = vector.load %arg17[%c2_45, %c0_46] : memref<18x64xf32, #tpu.memory_space<vmem>>, vector<16x64xf32>
    %c2_47 = arith.constant 2 : index
    %c0_48 = arith.constant 0 : index
    %c0_49 = arith.constant 0 : index
    %40 = vector.load %arg4[%c2_47, %c0_48, %c0_49] : memref<3x64x128xf32, #tpu.memory_space<vmem>>, vector<1x64x128xf32>
    %41 = vector.shape_cast %40 : vector<1x64x128xf32> to vector<64x128xf32>
    %cst_50 = arith.constant dense<0.000000e+00> : vector<16x128xf32>
    %42 = tpu.matmul %39, %41, %cst_50 {dimension_numbers = #tpu.dot_dimension_numbers<[1], [0], [0], [1], [0, 0, 1, 1], [], []>} : vector<16x64xf32>, vector<64x128xf32>, vector<16x128xf32> -> vector<16x128xf32>
    %43 = arith.addf %38, %42 : vector<16x128xf32>
    %c0_51 = arith.constant 0 : index
    %c0_52 = arith.constant 0 : index
    %44 = vector.load %arg5[%c0_51, %c0_52] : memref<1x128xf32, #tpu.memory_space<vmem>>, vector<1x128xf32>
    %45 = vector.broadcast %44 : vector<1x128xf32> to vector<16x128xf32>
    %46 = arith.addf %43, %45 : vector<16x128xf32>
    %cst_53 = arith.constant 0.000000e+00 : f32
    %47 = vector.broadcast %cst_53 : f32 to vector<16x128xf32>
    %48 = arith.maximumf %46, %47 : vector<16x128xf32>
    %c0_54 = arith.constant 0 : index
    %c0_55 = arith.constant 0 : index
    %49 = vector.load %arg17[%c0_54, %c0_55] : memref<18x64xf32, #tpu.memory_space<vmem>>, vector<16x64xf32>
    %c0_56 = arith.constant 0 : index
    %c0_57 = arith.constant 0 : index
    %c0_58 = arith.constant 0 : index
    %50 = vector.load %arg8[%c0_56, %c0_57, %c0_58] : memref<3x64x128xf32, #tpu.memory_space<vmem>>, vector<1x64x128xf32>
    %51 = vector.shape_cast %50 : vector<1x64x128xf32> to vector<64x128xf32>
    %cst_59 = arith.constant dense<0.000000e+00> : vector<16x128xf32>
    %52 = tpu.matmul %49, %51, %cst_59 {dimension_numbers = #tpu.dot_dimension_numbers<[1], [0], [0], [1], [0, 0, 1, 1], [], []>} : vector<16x64xf32>, vector<64x128xf32>, vector<16x128xf32> -> vector<16x128xf32>
    %c1_60 = arith.constant 1 : index
    %c0_61 = arith.constant 0 : index
    %53 = vector.load %arg17[%c1_60, %c0_61] : memref<18x64xf32, #tpu.memory_space<vmem>>, vector<16x64xf32>
    %c1_62 = arith.constant 1 : index
    %c0_63 = arith.constant 0 : index
    %c0_64 = arith.constant 0 : index
    %54 = vector.load %arg8[%c1_62, %c0_63, %c0_64] : memref<3x64x128xf32, #tpu.memory_space<vmem>>, vector<1x64x128xf32>
    %55 = vector.shape_cast %54 : vector<1x64x128xf32> to vector<64x128xf32>
    %cst_65 = arith.constant dense<0.000000e+00> : vector<16x128xf32>
    %56 = tpu.matmul %53, %55, %cst_65 {dimension_numbers = #tpu.dot_dimension_numbers<[1], [0], [0], [1], [0, 0, 1, 1], [], []>} : vector<16x64xf32>, vector<64x128xf32>, vector<16x128xf32> -> vector<16x128xf32>
    %57 = arith.addf %52, %56 : vector<16x128xf32>
    %c2_66 = arith.constant 2 : index
    %c0_67 = arith.constant 0 : index
    %58 = vector.load %arg17[%c2_66, %c0_67] : memref<18x64xf32, #tpu.memory_space<vmem>>, vector<16x64xf32>
    %c2_68 = arith.constant 2 : index
    %c0_69 = arith.constant 0 : index
    %c0_70 = arith.constant 0 : index
    %59 = vector.load %arg8[%c2_68, %c0_69, %c0_70] : memref<3x64x128xf32, #tpu.memory_space<vmem>>, vector<1x64x128xf32>
    %60 = vector.shape_cast %59 : vector<1x64x128xf32> to vector<64x128xf32>
    %cst_71 = arith.constant dense<0.000000e+00> : vector<16x128xf32>
    %61 = tpu.matmul %58, %60, %cst_71 {dimension_numbers = #tpu.dot_dimension_numbers<[1], [0], [0], [1], [0, 0, 1, 1], [], []>} : vector<16x64xf32>, vector<64x128xf32>, vector<16x128xf32> -> vector<16x128xf32>
    %62 = arith.addf %57, %61 : vector<16x128xf32>
    %c0_72 = arith.constant 0 : index
    %c0_73 = arith.constant 0 : index
    %63 = vector.load %arg9[%c0_72, %c0_73] : memref<1x128xf32, #tpu.memory_space<vmem>>, vector<1x128xf32>
    %64 = vector.broadcast %63 : vector<1x128xf32> to vector<16x128xf32>
    %65 = arith.addf %62, %64 : vector<16x128xf32>
    %cst_74 = arith.constant 0.000000e+00 : f32
    %66 = vector.broadcast %cst_74 : f32 to vector<16x128xf32>
    %67 = arith.maximumf %65, %66 : vector<16x128xf32>
    %c1_75 = arith.constant 1 : index
    %c0_76 = arith.constant 0 : index
    %68 = vector.load %arg18[%c1_75, %c0_76] : memref<18x128xf32, #tpu.memory_space<vmem>>, vector<16x128xf32>
    tpu.vector_store %arg18[%c1_75, %c0_76], %48 {strides = array<i32>} : memref<18x128xf32, #tpu.memory_space<vmem>>, vector<16x128xf32>,
    %c0_77 = arith.constant 0 : index
    %c0_78 = arith.constant 0 : index
    %69 = vector.load %arg18[%c0_77, %c0_78] : memref<18x128xf32, #tpu.memory_space<vmem>>, vector<16x128xf32>
    %c0_79 = arith.constant 0 : index
    %c0_80 = arith.constant 0 : index
    %c0_81 = arith.constant 0 : index
    %70 = vector.load %arg6[%c0_79, %c0_80, %c0_81] : memref<3x128x128xf32, #tpu.memory_space<vmem>>, vector<1x128x128xf32>
    %71 = vector.shape_cast %70 : vector<1x128x128xf32> to vector<128x128xf32>
    %cst_82 = arith.constant dense<0.000000e+00> : vector<16x128xf32>
    %72 = tpu.matmul %69, %71, %cst_82 {dimension_numbers = #tpu.dot_dimension_numbers<[1], [0], [0], [1], [0, 0, 1, 1], [], []>} : vector<16x128xf32>, vector<128x128xf32>, vector<16x128xf32> -> vector<16x128xf32>
    %c1_83 = arith.constant 1 : index
    %c0_84 = arith.constant 0 : index
    %73 = vector.load %arg18[%c1_83, %c0_84] : memref<18x128xf32, #tpu.memory_space<vmem>>, vector<16x128xf32>
    %c1_85 = arith.constant 1 : index
    %c0_86 = arith.constant 0 : index
    %c0_87 = arith.constant 0 : index
    %74 = vector.load %arg6[%c1_85, %c0_86, %c0_87] : memref<3x128x128xf32, #tpu.memory_space<vmem>>, vector<1x128x128xf32>
    %75 = vector.shape_cast %74 : vector<1x128x128xf32> to vector<128x128xf32>
    %cst_88 = arith.constant dense<0.000000e+00> : vector<16x128xf32>
    %76 = tpu.matmul %73, %75, %cst_88 {dimension_numbers = #tpu.dot_dimension_numbers<[1], [0], [0], [1], [0, 0, 1, 1], [], []>} : vector<16x128xf32>, vector<128x128xf32>, vector<16x128xf32> -> vector<16x128xf32>
    %77 = arith.addf %72, %76 : vector<16x128xf32>
    %c2_89 = arith.constant 2 : index
    %c0_90 = arith.constant 0 : index
    %78 = vector.load %arg18[%c2_89, %c0_90] : memref<18x128xf32, #tpu.memory_space<vmem>>, vector<16x128xf32>
    %c2_91 = arith.constant 2 : index
    %c0_92 = arith.constant 0 : index
    %c0_93 = arith.constant 0 : index
    %79 = vector.load %arg6[%c2_91, %c0_92, %c0_93] : memref<3x128x128xf32, #tpu.memory_space<vmem>>, vector<1x128x128xf32>
    %80 = vector.shape_cast %79 : vector<1x128x128xf32> to vector<128x128xf32>
    %cst_94 = arith.constant dense<0.000000e+00> : vector<16x128xf32>
    %81 = tpu.matmul %78, %80, %cst_94 {dimension_numbers = #tpu.dot_dimension_numbers<[1], [0], [0], [1], [0, 0, 1, 1], [], []>} : vector<16x128xf32>, vector<128x128xf32>, vector<16x128xf32> -> vector<16x128xf32>
    %82 = arith.addf %77, %81 : vector<16x128xf32>
    %c0_95 = arith.constant 0 : index
    %c0_96 = arith.constant 0 : index
    %83 = vector.load %arg7[%c0_95, %c0_96] : memref<1x128xf32, #tpu.memory_space<vmem>>, vector<1x128xf32>
    %84 = vector.broadcast %83 : vector<1x128xf32> to vector<16x128xf32>
    %85 = arith.addf %82, %84 : vector<16x128xf32>
    %cst_97 = arith.constant 0.000000e+00 : f32
    %86 = vector.broadcast %cst_97 : f32 to vector<16x128xf32>
    %87 = arith.maximumf %85, %86 : vector<16x128xf32>
    %c1_98 = arith.constant 1 : index
    %c0_99 = arith.constant 0 : index
    %88 = vector.load %arg18[%c1_98, %c0_99] : memref<18x128xf32, #tpu.memory_space<vmem>>, vector<16x128xf32>
    tpu.vector_store %arg18[%c1_98, %c0_99], %67 {strides = array<i32>} : memref<18x128xf32, #tpu.memory_space<vmem>>, vector<16x128xf32>,
    %c0_100 = arith.constant 0 : index
    %c0_101 = arith.constant 0 : index
    %89 = vector.load %arg18[%c0_100, %c0_101] : memref<18x128xf32, #tpu.memory_space<vmem>>, vector<16x128xf32>
    %c0_102 = arith.constant 0 : index
    %c0_103 = arith.constant 0 : index
    %c0_104 = arith.constant 0 : index
    %90 = vector.load %arg10[%c0_102, %c0_103, %c0_104] : memref<3x128x128xf32, #tpu.memory_space<vmem>>, vector<1x128x128xf32>
    %91 = vector.shape_cast %90 : vector<1x128x128xf32> to vector<128x128xf32>
    %cst_105 = arith.constant dense<0.000000e+00> : vector<16x128xf32>
    %92 = tpu.matmul %89, %91, %cst_105 {dimension_numbers = #tpu.dot_dimension_numbers<[1], [0], [0], [1], [0, 0, 1, 1], [], []>} : vector<16x128xf32>, vector<128x128xf32>, vector<16x128xf32> -> vector<16x128xf32>
    %c1_106 = arith.constant 1 : index
    %c0_107 = arith.constant 0 : index
    %93 = vector.load %arg18[%c1_106, %c0_107] : memref<18x128xf32, #tpu.memory_space<vmem>>, vector<16x128xf32>
    %c1_108 = arith.constant 1 : index
    %c0_109 = arith.constant 0 : index
    %c0_110 = arith.constant 0 : index
    %94 = vector.load %arg10[%c1_108, %c0_109, %c0_110] : memref<3x128x128xf32, #tpu.memory_space<vmem>>, vector<1x128x128xf32>
    %95 = vector.shape_cast %94 : vector<1x128x128xf32> to vector<128x128xf32>
    %cst_111 = arith.constant dense<0.000000e+00> : vector<16x128xf32>
    %96 = tpu.matmul %93, %95, %cst_111 {dimension_numbers = #tpu.dot_dimension_numbers<[1], [0], [0], [1], [0, 0, 1, 1], [], []>} : vector<16x128xf32>, vector<128x128xf32>, vector<16x128xf32> -> vector<16x128xf32>
    %97 = arith.addf %92, %96 : vector<16x128xf32>
    %c2_112 = arith.constant 2 : index
    %c0_113 = arith.constant 0 : index
    %98 = vector.load %arg18[%c2_112, %c0_113] : memref<18x128xf32, #tpu.memory_space<vmem>>, vector<16x128xf32>
    %c2_114 = arith.constant 2 : index
    %c0_115 = arith.constant 0 : index
    %c0_116 = arith.constant 0 : index
    %99 = vector.load %arg10[%c2_114, %c0_115, %c0_116] : memref<3x128x128xf32, #tpu.memory_space<vmem>>, vector<1x128x128xf32>
    %100 = vector.shape_cast %99 : vector<1x128x128xf32> to vector<128x128xf32>
    %cst_117 = arith.constant dense<0.000000e+00> : vector<16x128xf32>
    %101 = tpu.matmul %98, %100, %cst_117 {dimension_numbers = #tpu.dot_dimension_numbers<[1], [0], [0], [1], [0, 0, 1, 1], [], []>} : vector<16x128xf32>, vector<128x128xf32>, vector<16x128xf32> -> vector<16x128xf32>
    %102 = arith.addf %97, %101 : vector<16x128xf32>
    %c0_118 = arith.constant 0 : index
    %c0_119 = arith.constant 0 : index
    %103 = vector.load %arg11[%c0_118, %c0_119] : memref<1x128xf32, #tpu.memory_space<vmem>>, vector<1x128xf32>
    %104 = vector.broadcast %103 : vector<1x128xf32> to vector<16x128xf32>
    %105 = arith.addf %102, %104 : vector<16x128xf32>
    %cst_120 = arith.constant 0.000000e+00 : f32
    %106 = vector.broadcast %cst_120 : f32 to vector<16x128xf32>
    %107 = arith.maximumf %105, %106 : vector<16x128xf32>
    %c1_121 = arith.constant 1 : index
    %c0_122 = arith.constant 0 : index
    %108 = vector.load %arg18[%c1_121, %c0_122] : memref<18x128xf32, #tpu.memory_space<vmem>>, vector<16x128xf32>
    tpu.vector_store %arg18[%c1_121, %c0_122], %107 {strides = array<i32>} : memref<18x128xf32, #tpu.memory_space<vmem>>, vector<16x128xf32>,
    %c0_123 = arith.constant 0 : index
    %c0_124 = arith.constant 0 : index
    %109 = vector.load %arg18[%c0_123, %c0_124] : memref<18x128xf32, #tpu.memory_space<vmem>>, vector<16x128xf32>
    %c0_125 = arith.constant 0 : index
    %c0_126 = arith.constant 0 : index
    %c0_127 = arith.constant 0 : index
    %110 = vector.load %arg12[%c0_125, %c0_126, %c0_127] : memref<3x128x128xf32, #tpu.memory_space<vmem>>, vector<1x128x128xf32>
    %111 = vector.shape_cast %110 : vector<1x128x128xf32> to vector<128x128xf32>
    %cst_128 = arith.constant dense<0.000000e+00> : vector<16x128xf32>
    %112 = tpu.matmul %109, %111, %cst_128 {dimension_numbers = #tpu.dot_dimension_numbers<[1], [0], [0], [1], [0, 0, 1, 1], [], []>} : vector<16x128xf32>, vector<128x128xf32>, vector<16x128xf32> -> vector<16x128xf32>
    %c1_129 = arith.constant 1 : index
    %c0_130 = arith.constant 0 : index
    %113 = vector.load %arg18[%c1_129, %c0_130] : memref<18x128xf32, #tpu.memory_space<vmem>>, vector<16x128xf32>
    %c1_131 = arith.constant 1 : index
    %c0_132 = arith.constant 0 : index
    %c0_133 = arith.constant 0 : index
    %114 = vector.load %arg12[%c1_131, %c0_132, %c0_133] : memref<3x128x128xf32, #tpu.memory_space<vmem>>, vector<1x128x128xf32>
    %115 = vector.shape_cast %114 : vector<1x128x128xf32> to vector<128x128xf32>
    %cst_134 = arith.constant dense<0.000000e+00> : vector<16x128xf32>
    %116 = tpu.matmul %113, %115, %cst_134 {dimension_numbers = #tpu.dot_dimension_numbers<[1], [0], [0], [1], [0, 0, 1, 1], [], []>} : vector<16x128xf32>, vector<128x128xf32>, vector<16x128xf32> -> vector<16x128xf32>
    %117 = arith.addf %112, %116 : vector<16x128xf32>
    %c2_135 = arith.constant 2 : index
    %c0_136 = arith.constant 0 : index
    %118 = vector.load %arg18[%c2_135, %c0_136] : memref<18x128xf32, #tpu.memory_space<vmem>>, vector<16x128xf32>
    %c2_137 = arith.constant 2 : index
    %c0_138 = arith.constant 0 : index
    %c0_139 = arith.constant 0 : index
    %119 = vector.load %arg12[%c2_137, %c0_138, %c0_139] : memref<3x128x128xf32, #tpu.memory_space<vmem>>, vector<1x128x128xf32>
    %120 = vector.shape_cast %119 : vector<1x128x128xf32> to vector<128x128xf32>
    %cst_140 = arith.constant dense<0.000000e+00> : vector<16x128xf32>
    %121 = tpu.matmul %118, %120, %cst_140 {dimension_numbers = #tpu.dot_dimension_numbers<[1], [0], [0], [1], [0, 0, 1, 1], [], []>} : vector<16x128xf32>, vector<128x128xf32>, vector<16x128xf32> -> vector<16x128xf32>
    %122 = arith.addf %117, %121 : vector<16x128xf32>
    %c0_141 = arith.constant 0 : index
    %c0_142 = arith.constant 0 : index
    %123 = vector.load %arg13[%c0_141, %c0_142] : memref<1x128xf32, #tpu.memory_space<vmem>>, vector<1x128xf32>
    %124 = vector.broadcast %123 : vector<1x128xf32> to vector<16x128xf32>
    %125 = arith.addf %122, %124 : vector<16x128xf32>
    %cst_143 = arith.constant 0.000000e+00 : f32
    %126 = vector.broadcast %cst_143 : f32 to vector<16x128xf32>
    %127 = arith.maximumf %125, %126 : vector<16x128xf32>
    %c0_144 = arith.constant 0 : index
    %c0_145 = arith.constant 0 : index
    %c0_146 = arith.constant 0 : index
    %128 = vector.load %arg14[%c0_144, %c0_145, %c0_146] : memref<3x128x64xf32, #tpu.memory_space<vmem>>, vector<1x128x64xf32>
    %129 = vector.shape_cast %128 : vector<1x128x64xf32> to vector<128x64xf32>
    %cst_147 = arith.constant dense<0.000000e+00> : vector<16x64xf32>
    %130 = tpu.matmul %29, %129, %cst_147 {dimension_numbers = #tpu.dot_dimension_numbers<[1], [0], [0], [1], [0, 0, 1, 1], [], []>} : vector<16x128xf32>, vector<128x64xf32>, vector<16x64xf32> -> vector<16x64xf32>
    %c1_148 = arith.constant 1 : index
    %c0_149 = arith.constant 0 : index
    %c0_150 = arith.constant 0 : index
    %131 = vector.load %arg14[%c1_148, %c0_149, %c0_150] : memref<3x128x64xf32, #tpu.memory_space<vmem>>, vector<1x128x64xf32>
    %132 = vector.shape_cast %131 : vector<1x128x64xf32> to vector<128x64xf32>
    %cst_151 = arith.constant dense<0.000000e+00> : vector<16x64xf32>
    %133 = tpu.matmul %87, %132, %cst_151 {dimension_numbers = #tpu.dot_dimension_numbers<[1], [0], [0], [1], [0, 0, 1, 1], [], []>} : vector<16x128xf32>, vector<128x64xf32>, vector<16x64xf32> -> vector<16x64xf32>
    %134 = arith.addf %130, %133 : vector<16x64xf32>
    %c2_152 = arith.constant 2 : index
    %c0_153 = arith.constant 0 : index
    %c0_154 = arith.constant 0 : index
    %135 = vector.load %arg14[%c2_152, %c0_153, %c0_154] : memref<3x128x64xf32, #tpu.memory_space<vmem>>, vector<1x128x64xf32>
    %136 = vector.shape_cast %135 : vector<1x128x64xf32> to vector<128x64xf32>
    %cst_155 = arith.constant dense<0.000000e+00> : vector<16x64xf32>
    %137 = tpu.matmul %127, %136, %cst_155 {dimension_numbers = #tpu.dot_dimension_numbers<[1], [0], [0], [1], [0, 0, 1, 1], [], []>} : vector<16x128xf32>, vector<128x64xf32>, vector<16x64xf32> -> vector<16x64xf32>
    %138 = arith.addf %134, %137 : vector<16x64xf32>
    %c0_156 = arith.constant 0 : index
    %c0_157 = arith.constant 0 : index
    %139 = vector.load %arg15[%c0_156, %c0_157] : memref<1x64xf32, #tpu.memory_space<vmem>>, vector<1x64xf32>
    %140 = vector.broadcast %139 : vector<1x64xf32> to vector<16x64xf32>
    %141 = arith.addf %138, %140 : vector<16x64xf32>
    %cst_158 = arith.constant 0.000000e+00 : f32
    %142 = vector.broadcast %cst_158 : f32 to vector<16x64xf32>
    %143 = arith.maximumf %141, %142 : vector<16x64xf32>
    %144 = arith.addf %143, %1 : vector<16x64xf32>
    %c0_159 = arith.constant 0 : index
    %c0_160 = arith.constant 0 : index
    %c0_161 = arith.constant 0 : index
    %145 = vector.load %arg16[%c0_159, %c0_160, %c0_161] : memref<1x16x64xf32, #tpu.memory_space<vmem>>, vector<1x16x64xf32>
    %146 = vector.shape_cast %145 : vector<1x16x64xf32> to vector<16x64xf32>
    %147 = vector.shape_cast %144 : vector<16x64xf32> to vector<1x16x64xf32>
    tpu.vector_store %arg16[%c0_159, %c0_160, %c0_161], %147 {strides = array<i32>} : memref<1x16x64xf32, #tpu.memory_space<vmem>>, vector<1x16x64xf32>,
    return
  }
  func.func @transform_0(%arg0: i32) -> (i32, i32, i32) {
    %c0_i32 = arith.constant 0 : i32
    %c0_i32_0 = arith.constant 0 : i32
    %c0_i32_1 = arith.constant 0 : i32
    return %arg0, %c0_i32, %c0_i32_0 : i32, i32, i32
  }
  func.func @transform_1(%arg0: i32) -> (i32, i32, i32) {
    %c0_i32 = arith.constant 0 : i32
    %c0_i32_0 = arith.constant 0 : i32
    %c0_i32_1 = arith.constant 0 : i32
    %c0_i32_2 = arith.constant 0 : i32
    return %c0_i32, %c0_i32_0, %c0_i32_1 : i32, i32, i32
  }
  func.func @transform_2(%arg0: i32) -> (i32, i32) {
    %c0_i32 = arith.constant 0 : i32
    %c0_i32_0 = arith.constant 0 : i32
    %c0_i32_1 = arith.constant 0 : i32
    return %c0_i32, %c0_i32_0 : i32, i32
  }
  func.func @transform_3(%arg0: i32) -> (i32, i32, i32) {
    %c0_i32 = arith.constant 0 : i32
    %c0_i32_0 = arith.constant 0 : i32
    %c0_i32_1 = arith.constant 0 : i32
    %c0_i32_2 = arith.constant 0 : i32
    return %c0_i32, %c0_i32_0, %c0_i32_1 : i32, i32, i32
  }
  func.func @transform_4(%arg0: i32) -> (i32, i32) {
    %c0_i32 = arith.constant 0 : i32
    %c0_i32_0 = arith.constant 0 : i32
    %c0_i32_1 = arith.constant 0 : i32
    return %c0_i32, %c0_i32_0 : i32, i32
  }
  func.func @transform_5(%arg0: i32) -> (i32, i32, i32) {
    %c0_i32 = arith.constant 0 : i32
    %c0_i32_0 = arith.constant 0 : i32
    %c0_i32_1 = arith.constant 0 : i32
    %c0_i32_2 = arith.constant 0 : i32
    return %c0_i32, %c0_i32_0, %c0_i32_1 : i32, i32, i32
  }
  func.func @transform_6(%arg0: i32) -> (i32, i32) {
    %c0_i32 = arith.constant 0 : i32
    %c0_i32_0 = arith.constant 0 : i32
    %c0_i32_1 = arith.constant 0 : i32
    return %c0_i32, %c0_i32_0 : i32, i32
  }
  func.func @transform_7(%arg0: i32) -> (i32, i32, i32) {
    %c0_i32 = arith.constant 0 : i32
    %c0_i32_0 = arith.constant 0 : i32
    %c0_i32_1 = arith.constant 0 : i32
    %c0_i32_2 = arith.constant 0 : i32
    return %c0_i32, %c0_i32_0, %c0_i32_1 : i32, i32, i32
  }
  func.func @transform_8(%arg0: i32) -> (i32, i32) {
    %c0_i32 = arith.constant 0 : i32
    %c0_i32_0 = arith.constant 0 : i32
    %c0_i32_1 = arith.constant 0 : i32
    return %c0_i32, %c0_i32_0 : i32, i32
  }
  func.func @transform_9(%arg0: i32) -> (i32, i32, i32) {
    %c0_i32 = arith.constant 0 : i32
    %c0_i32_0 = arith.constant 0 : i32
    %c0_i32_1 = arith.constant 0 : i32
    %c0_i32_2 = arith.constant 0 : i32
    return %c0_i32, %c0_i32_0, %c0_i32_1 : i32, i32, i32
  }
  func.func @transform_10(%arg0: i32) -> (i32, i32) {
    %c0_i32 = arith.constant 0 : i32
    %c0_i32_0 = arith.constant 0 : i32
    %c0_i32_1 = arith.constant 0 : i32
    return %c0_i32, %c0_i32_0 : i32, i32
  }
  func.func @transform_11(%arg0: i32) -> (i32, i32, i32) {
    %c0_i32 = arith.constant 0 : i32
    %c0_i32_0 = arith.constant 0 : i32
    %c0_i32_1 = arith.constant 0 : i32
    %c0_i32_2 = arith.constant 0 : i32
    return %c0_i32, %c0_i32_0, %c0_i32_1 : i32, i32, i32
  }
  func.func @transform_12(%arg0: i32) -> (i32, i32) {
    %c0_i32 = arith.constant 0 : i32
    %c0_i32_0 = arith.constant 0 : i32
    %c0_i32_1 = arith.constant 0 : i32
    return %c0_i32, %c0_i32_0 : i32, i32
  }
  func.func @transform_13(%arg0: i32) -> (i32, i32, i32) {
    %c0_i32 = arith.constant 0 : i32
    %c0_i32_0 = arith.constant 0 : i32
    %c0_i32_1 = arith.constant 0 : i32
    %c0_i32_2 = arith.constant 0 : i32
    return %c0_i32, %c0_i32_0, %c0_i32_1 : i32, i32, i32
  }
  func.func @transform_14(%arg0: i32) -> (i32, i32) {
    %c0_i32 = arith.constant 0 : i32
    %c0_i32_0 = arith.constant 0 : i32
    %c0_i32_1 = arith.constant 0 : i32
    return %c0_i32, %c0_i32_0 : i32, i32
  }
  func.func @transform_15(%arg0: i32) -> (i32, i32, i32) {
    %c0_i32 = arith.constant 0 : i32
    %c0_i32_0 = arith.constant 0 : i32
    %c0_i32_1 = arith.constant 0 : i32
    return %arg0, %c0_i32, %c0_i32_0 : i32, i32, i32
  }
}

</mosaic_0001>

<bundles_post_ra>
// kernel: tile.38
= control target key start
LH: loop header
LB: loop body
LE: loop exit
PB: predicated region body
PF: predicated region fallthrough
CT: control target
= control target key end

     0   :  { %s28_s0 = inlined_call_operand.vmem [shape: f32[8], index: 0, kind: input, shape index: {}]   ;;  %s29_s1 = inlined_call_operand.vmem [shape: f32[16,8], index: 1, kind: output, shape index: {}]  }
   0x1   :  { %v4_v0 = vld [vmem:[%s28_s0] ss:$0 sm:$0xff] }
   0x2   :  { %5 = vst [vmem:[%s29_s1] sm:$0xff] %v4_v0  ;;  %8 = vst [vmem:[%s29_s1 + $0x8] sm:$0xff] %v4_v0 }

// kernel: tile.39
= control target key start
LH: loop header
LB: loop body
LE: loop exit
PB: predicated region body
PF: predicated region fallthrough
CT: control target
= control target key end

     0   :  { %s131_s10 = smov 120   ;;  %s132_s11 = smov 104   ;;  %vm3_vm0 = vcmask 64512   ;;  %vm9_vm1 = vcmask 1048512   ;;  %vm15_vm2 = vcmask 982912   ;;  %vm21_vm3 = vcmask 917312   ;;  %s207_s0 = inlined_call_operand.vmem [shape: f32[16,8], index: 0, kind: input, shape index: {}]   ;;  %s208_s1 = inlined_call_operand.vmem [shape: f32[1,128], index: 1, kind: output, shape index: {}]  }
   0x1   :  { %v101_v0 = vld [vmem:[%s207_s0 + $0xf] sm:$0x1]   ;;  %v103_v1 = vld [vmem:[%s207_s0 + $0xd] sm:$0x1]   ;;  %v102_v2 = vld [vmem:[%s207_s0 + $0xe] sm:$0x1]  }
   0x2   :  { %7 = vrot.lane.b32.xlu0 %v101_v0, %s131_s10  ;;  %19 = vrot.lane.b32.xlu1 %v103_v1, %s132_s11  ;;  %v104_v3 = vld [vmem:[%s207_s0 + $0xc] sm:$0x1]   ;;  %s133_s16 = smov 112   ;;  %s134_s17 = smov 96   ;;  %v105_v4 = vld [vmem:[%s207_s0 + $0xb] sm:$0x1]  }
   0x3   :  { %v106_v5 = vld [vmem:[%s207_s0 + $0xa] sm:$0x1]   ;;  %v2_v6 = vld [vmem:[%s207_s0] sm:$0x1]   ;;  %s135_s24 = smov 88   ;;  %s136_s25 = smov 80  }
   0x4   :  { %4 = vst.msk [vmem:[#allocation0] sm:$0x1] %vm3_vm0, %v2_v6   ;;  %v107_v7 = vld [vmem:[%s207_s0 + $0x9] sm:$0x1]   ;;  %v108_v8 = vld [vmem:[%s207_s0 + $0x8] sm:$0x1]  }
   0x5   :  { %s137_s30 = smov 72   ;;  %s138_s2 = smov 64   ;;  %v109_v9 = vld [vmem:[%s207_s0 + $0x7] sm:$0x1]   ;;  %v110_v10 = vld [vmem:[%s207_s0 + $0x6] sm:$0x1]  }
   0x6   :  { %13 = vrot.lane.b32.xlu0 %v102_v2, %s133_s16  ;;  %25 = vrot.lane.b32.xlu1 %v104_v3, %s134_s17  ;;  %s139_s7 = smov 56   ;;  %s140_s8 = smov 48   ;;  %v111_v11 = vld [vmem:[%s207_s0 + $0x5] sm:$0x1]   ;;  %v112_v12 = vld [vmem:[%s207_s0 + $0x4] sm:$0x1]  }
   0x7   :  { %s141_s13 = smov 40   ;;  %s142_s14 = smov 32   ;;  %v113_v13 = vld [vmem:[%s207_s0 + $0x3] sm:$0x1]   ;;  %v114_v14 = vld [vmem:[%s207_s0 + $0x2] sm:$0x1]  }
   0x8   :  { %s143_s19 = smov 24   ;;  %s144_s20 = smov 16   ;;  %v115_v15 = vld [vmem:[%s207_s0 + $0x1] sm:$0x1]   ;;  %vm27_vm4 = vcmask 851712   ;;  %vm33_vm5 = vcmask 786112  }
   0x9   :  { %s145_s0 = smov 8   ;;  %vm39_vm6 = vcmask 720512   ;;  %vm45_vm7 = vcmask 654912   ;;  %vm51_vm8 = vcmask 589312   ;;  %vm57_vm9 = vcmask 523712  }
   0xa   :  { %31 = vrot.lane.b32.xlu0 %v105_v4, %s135_s24  ;;  %37 = vrot.lane.b32.xlu1 %v106_v5, %s136_s25  ;;  %vm63_vm10 = vcmask 458112   ;;  %vm69_vm11 = vcmask 392512   ;;  %vm75_vm12 = vcmask 326912   ;;  %vm81_vm13 = vcmask 261312  }
   0xb   :  { %vm87_vm14 = vcmask 195712   ;;  %vm93_vm15 = vcmask 130112  }
   0xe   :  { %43 = vrot.lane.b32.xlu0 %v107_v7, %s137_s30  ;;  %49 = vrot.lane.b32.xlu1 %v108_v8, %s138_s2 }
  0x12   :  { %55 = vrot.lane.b32.xlu0 %v109_v9, %s139_s7  ;;  %61 = vrot.lane.b32.xlu1 %v110_v10, %s140_s8 }
  0x16   :  { %67 = vrot.lane.b32.xlu0 %v111_v11, %s141_s13  ;;  %73 = vrot.lane.b32.xlu1 %v112_v12, %s142_s14 }
  0x1a   :  { %79 = vrot.lane.b32.xlu0 %v113_v13, %s143_s19  ;;  %85 = vrot.lane.b32.xlu1 %v114_v14, %s144_s20 }
  0x1e   :  { %91 = vrot.lane.b32.xlu0 %v115_v15, %s145_s0 }
  0x74   :  { %v8_v16 = vpop.permute.xlu0 %7   ;;  %v20_v17 = vpop.permute.xlu1 %19  }
  0x75   :  { %10 = vst.msk [vmem:[#allocation0] sm:$0x1] %vm9_vm1, %v8_v16  }
  0x78   :  { %v14_v18 = vpop.permute.xlu0 %13   ;;  %v26_v19 = vpop.permute.xlu1 %25  }
  0x79   :  { %16 = vst.msk [vmem:[#allocation0] sm:$0x1] %vm15_vm2, %v14_v18  }
  0x7a   :  { %22 = vst.msk [vmem:[#allocation0] sm:$0x1] %vm21_vm3, %v20_v17  }
  0x7b   :  { %28 = vst.msk [vmem:[#allocation0] sm:$0x1] %vm27_vm4, %v26_v19  }
  0x7c   :  { %v32_v20 = vpop.permute.xlu0 %31   ;;  %v38_v21 = vpop.permute.xlu1 %37  }
  0x7d   :  { %34 = vst.msk [vmem:[#allocation0] sm:$0x1] %vm33_vm5, %v32_v20  }
  0x7e   :  { %40 = vst.msk [vmem:[#allocation0] sm:$0x1] %vm39_vm6, %v38_v21  }
  0x80   :  { %v44_v22 = vpop.permute.xlu0 %43   ;;  %v50_v23 = vpop.permute.xlu1 %49  }
  0x81   :  { %46 = vst.msk [vmem:[#allocation0] sm:$0x1] %vm45_vm7, %v44_v22  }
  0x82   :  { %52 = vst.msk [vmem:[#allocation0] sm:$0x1] %vm51_vm8, %v50_v23  }
  0x84   :  { %v56_v24 = vpop.permute.xlu0 %55   ;;  %v62_v25 = vpop.permute.xlu1 %61  }
  0x85   :  { %58 = vst.msk [vmem:[#allocation0] sm:$0x1] %vm57_vm9, %v56_v24  }
  0x86   :  { %64 = vst.msk [vmem:[#allocation0] sm:$0x1] %vm63_vm10, %v62_v25  }
  0x88   :  { %v68_v26 = vpop.permute.xlu0 %67   ;;  %v74_v27 = vpop.permute.xlu1 %73  }
  0x89   :  { %70 = vst.msk [vmem:[#allocation0] sm:$0x1] %vm69_vm11, %v68_v26  }
  0x8a   :  { %76 = vst.msk [vmem:[#allocation0] sm:$0x1] %vm75_vm12, %v74_v27  }
  0x8c   :  { %v80_v28 = vpop.permute.xlu0 %79   ;;  %v86_v29 = vpop.permute.xlu1 %85  }
  0x8d   :  { %82 = vst.msk [vmem:[#allocation0] sm:$0x1] %vm81_vm13, %v80_v28  }
  0x8e   :  { %88 = vst.msk [vmem:[#allocation0] sm:$0x1] %vm87_vm14, %v86_v29  }
  0x90   :  { %v92_v30 = vpop.permute.xlu0 %91  }
  0x91   :  { %94 = vst.msk [vmem:[#allocation0] sm:$0x1] %vm93_vm15, %v92_v30  }
  0x98   :  { %v98_v31 = vld [vmem:[#allocation0] sm:$0x1] }
  0x99   :  { %100 = vst [vmem:[%s208_s1] sm:$0x1] %v98_v31 }

// kernel: tile.68
= control target key start
LH: loop header
LB: loop body
LE: loop exit
PB: predicated region body
PF: predicated region fallthrough
CT: control target
= control target key end

     0   :  { %s28_s0 = inlined_call_operand.vmem [shape: f32[4], index: 0, kind: input, shape index: {}]   ;;  %s29_s1 = inlined_call_operand.vmem [shape: f32[16,4], index: 1, kind: output, shape index: {}]  }
   0x1   :  { %v4_v0 = vld [vmem:[%s28_s0] ss:$0 sm:$0xff] }
   0x2   :  { %5 = vst [vmem:[%s29_s1] sm:$0xff] %v4_v0  ;;  %8 = vst [vmem:[%s29_s1 + $0x8] sm:$0xff] %v4_v0 }

// kernel: tile.69
= control target key start
LH: loop header
LB: loop body
LE: loop exit
PB: predicated region body
PF: predicated region fallthrough
CT: control target
= control target key end

     0   :  { %s131_s10 = smov 60   ;;  %s132_s11 = smov 52   ;;  %vm3_vm0 = vcmask 31744   ;;  %vm9_vm1 = vcmask 523744   ;;  %vm15_vm2 = vcmask 490944   ;;  %vm21_vm3 = vcmask 458144   ;;  %s207_s0 = inlined_call_operand.vmem [shape: f32[16,4], index: 0, kind: input, shape index: {}]   ;;  %s208_s1 = inlined_call_operand.vmem [shape: f32[1,64], index: 1, kind: output, shape index: {}]  }
   0x1   :  { %v101_v0 = vld [vmem:[%s207_s0 + $0xf] sm:$0x1]   ;;  %v103_v1 = vld [vmem:[%s207_s0 + $0xd] sm:$0x1]   ;;  %v102_v2 = vld [vmem:[%s207_s0 + $0xe] sm:$0x1]  }
   0x2   :  { %7 = vrot.lane.b32.xlu0 %v101_v0, %s131_s10  ;;  %19 = vrot.lane.b32.xlu1 %v103_v1, %s132_s11  ;;  %v104_v3 = vld [vmem:[%s207_s0 + $0xc] sm:$0x1]   ;;  %s133_s16 = smov 56   ;;  %s134_s17 = smov 48   ;;  %v105_v4 = vld [vmem:[%s207_s0 + $0xb] sm:$0x1]  }
   0x3   :  { %v106_v5 = vld [vmem:[%s207_s0 + $0xa] sm:$0x1]   ;;  %v2_v6 = vld [vmem:[%s207_s0] sm:$0x1]   ;;  %s135_s24 = smov 44   ;;  %s136_s25 = smov 40  }
   0x4   :  { %4 = vst.msk [vmem:[#allocation0] sm:$0x1] %vm3_vm0, %v2_v6   ;;  %v107_v7 = vld [vmem:[%s207_s0 + $0x9] sm:$0x1]   ;;  %v108_v8 = vld [vmem:[%s207_s0 + $0x8] sm:$0x1]  }
   0x5   :  { %s137_s30 = smov 36   ;;  %s138_s2 = smov 32   ;;  %v109_v9 = vld [vmem:[%s207_s0 + $0x7] sm:$0x1]   ;;  %v110_v10 = vld [vmem:[%s207_s0 + $0x6] sm:$0x1]  }
   0x6   :  { %13 = vrot.lane.b32.xlu0 %v102_v2, %s133_s16  ;;  %25 = vrot.lane.b32.xlu1 %v104_v3, %s134_s17  ;;  %s139_s7 = smov 28   ;;  %s140_s8 = smov 24   ;;  %v111_v11 = vld [vmem:[%s207_s0 + $0x5] sm:$0x1]   ;;  %v112_v12 = vld [vmem:[%s207_s0 + $0x4] sm:$0x1]  }
   0x7   :  { %s141_s13 = smov 20   ;;  %s142_s14 = smov 16   ;;  %v113_v13 = vld [vmem:[%s207_s0 + $0x3] sm:$0x1]   ;;  %v114_v14 = vld [vmem:[%s207_s0 + $0x2] sm:$0x1]  }
   0x8   :  { %s143_s19 = smov 12   ;;  %s144_s20 = smov 8   ;;  %v115_v15 = vld [vmem:[%s207_s0 + $0x1] sm:$0x1]   ;;  %vm27_vm4 = vcmask 425344   ;;  %vm33_vm5 = vcmask 392544  }
   0x9   :  { %s145_s0 = smov 4   ;;  %vm39_vm6 = vcmask 359744   ;;  %vm45_vm7 = vcmask 326944   ;;  %vm51_vm8 = vcmask 294144   ;;  %vm57_vm9 = vcmask 261344  }
   0xa   :  { %31 = vrot.lane.b32.xlu0 %v105_v4, %s135_s24  ;;  %37 = vrot.lane.b32.xlu1 %v106_v5, %s136_s25  ;;  %vm63_vm10 = vcmask 228544   ;;  %vm69_vm11 = vcmask 195744   ;;  %vm75_vm12 = vcmask 162944   ;;  %vm81_vm13 = vcmask 130144  }
   0xb   :  { %vm87_vm14 = vcmask 97344   ;;  %vm93_vm15 = vcmask 64544  }
   0xe   :  { %43 = vrot.lane.b32.xlu0 %v107_v7, %s137_s30  ;;  %49 = vrot.lane.b32.xlu1 %v108_v8, %s138_s2 }
  0x12   :  { %55 = vrot.lane.b32.xlu0 %v109_v9, %s139_s7  ;;  %61 = vrot.lane.b32.xlu1 %v110_v10, %s140_s8 }
  0x16   :  { %67 = vrot.lane.b32.xlu0 %v111_v11, %s141_s13  ;;  %73 = vrot.lane.b32.xlu1 %v112_v12, %s142_s14 }
  0x1a   :  { %79 = vrot.lane.b32.xlu0 %v113_v13, %s143_s19  ;;  %85 = vrot.lane.b32.xlu1 %v114_v14, %s144_s20 }
  0x1e   :  { %91 = vrot.lane.b32.xlu0 %v115_v15, %s145_s0 }
  0x74   :  { %v8_v16 = vpop.permute.xlu0 %7   ;;  %v20_v17 = vpop.permute.xlu1 %19  }
  0x75   :  { %10 = vst.msk [vmem:[#allocation0] sm:$0x1] %vm9_vm1, %v8_v16  }
  0x78   :  { %v14_v18 = vpop.permute.xlu0 %13   ;;  %v26_v19 = vpop.permute.xlu1 %25  }
  0x79   :  { %16 = vst.msk [vmem:[#allocation0] sm:$0x1] %vm15_vm2, %v14_v18  }
  0x7a   :  { %22 = vst.msk [vmem:[#allocation0] sm:$0x1] %vm21_vm3, %v20_v17  }
  0x7b   :  { %28 = vst.msk [vmem:[#allocation0] sm:$0x1] %vm27_vm4, %v26_v19  }
  0x7c   :  { %v32_v20 = vpop.permute.xlu0 %31   ;;  %v38_v21 = vpop.permute.xlu1 %37  }
  0x7d   :  { %34 = vst.msk [vmem:[#allocation0] sm:$0x1] %vm33_vm5, %v32_v20  }
  0x7e   :  { %40 = vst.msk [vmem:[#allocation0] sm:$0x1] %vm39_vm6, %v38_v21  }
  0x80   :  { %v44_v22 = vpop.permute.xlu0 %43   ;;  %v50_v23 = vpop.permute.xlu1 %49  }
  0x81   :  { %46 = vst.msk [vmem:[#allocation0] sm:$0x1] %vm45_vm7, %v44_v22  }
  0x82   :  { %52 = vst.msk [vmem:[#allocation0] sm:$0x1] %vm51_vm8, %v50_v23  }
  0x84   :  { %v56_v24 = vpop.permute.xlu0 %55   ;;  %v62_v25 = vpop.permute.xlu1 %61  }
  0x85   :  { %58 = vst.msk [vmem:[#allocation0] sm:$0x1] %vm57_vm9, %v56_v24  }
  0x86   :  { %64 = vst.msk [vmem:[#allocation0] sm:$0x1] %vm63_vm10, %v62_v25  }
  0x88   :  { %v68_v26 = vpop.permute.xlu0 %67   ;;  %v74_v27 = vpop.permute.xlu1 %73  }
  0x89   :  { %70 = vst.msk [vmem:[#allocation0] sm:$0x1] %vm69_vm11, %v68_v26  }
  0x8a   :  { %76 = vst.msk [vmem:[#allocation0] sm:$0x1] %vm75_vm12, %v74_v27  }
  0x8c   :  { %v80_v28 = vpop.permute.xlu0 %79   ;;  %v86_v29 = vpop.permute.xlu1 %85  }
  0x8d   :  { %82 = vst.msk [vmem:[#allocation0] sm:$0x1] %vm81_vm13, %v80_v28  }
  0x8e   :  { %88 = vst.msk [vmem:[#allocation0] sm:$0x1] %vm87_vm14, %v86_v29  }
  0x90   :  { %v92_v30 = vpop.permute.xlu0 %91  }
  0x91   :  { %94 = vst.msk [vmem:[#allocation0] sm:$0x1] %vm93_vm15, %v92_v30  }
  0x98   :  { %v98_v31 = vld [vmem:[#allocation0] sm:$0x1] }
  0x99   :  { %100 = vst [vmem:[%s208_s1] sm:$0x1] %v98_v31 }

// kernel: inception_resnet_forward.1
= control target key start
LH: loop header
LB: loop body
LE: loop exit
PB: predicated region body
PF: predicated region fallthrough
CT: control target
= control target key end

     0   :  { %s4321_s18 = smov 0   ;;  %s5235_s0 = inlined_call_operand.vmem [shape: f32[2,16,64], index: 0, kind: input, shape index: {}]   ;;  %s5236_s1 = inlined_call_operand.vmem [shape: f32[3,64,128], index: 1, kind: input, shape index: {}]   ;;  %s5237_s2 = inlined_call_operand.vmem [shape: f32[1,128], index: 2, kind: input, shape index: {}]   ;;  %s5238_s3 = inlined_call_operand.vmem [shape: f32[3,64,128], index: 3, kind: input, shape index: {}]   ;;  %s5239_s4 = inlined_call_operand.vmem [shape: f32[1,128], index: 4, kind: input, shape index: {}]   ;;  %s5240_s5 = inlined_call_operand.vmem [shape: f32[3,128,128], index: 5, kind: input, shape index: {}]   ;;  %s5241_s6 = inlined_call_operand.vmem [shape: f32[1,128], index: 6, kind: input, shape index: {}]   ;;  %s5242_s7 = inlined_call_operand.vmem [shape: f32[3,64,128], index: 7, kind: input, shape index: {}]   ;;  %s5243_s8 = inlined_call_operand.vmem [shape: f32[1,128], index: 8, kind: input, shape index: {}]   ;;  %s5244_s9 = inlined_call_operand.vmem [shape: f32[3,128,128], index: 9, kind: input, shape index: {}]   ;;  %s5245_s10 = inlined_call_operand.vmem [shape: f32[1,128], index: 10, kind: input, shape index: {}]   ;;  %s5246_s11 = inlined_call_operand.vmem [shape: f32[3,128,128], index: 11, kind: input, shape index: {}]   ;;  %s5247_s12 = inlined_call_operand.vmem [shape: f32[1,128], index: 12, kind: input, shape index: {}]   ;;  %s5248_s13 = inlined_call_operand.vmem [shape: f32[3,128,64], index: 13, kind: input, shape index: {}]   ;;  %s5249_s14 = inlined_call_operand.vmem [shape: f32[1,64], index: 14, kind: input, shape index: {}]   ;;  %s5250_s15 = inlined_call_operand.vmem [shape: f32[2,16,64], index: 15, kind: output, shape index: {}]  }
   0x1 LB: > { %s2556_s19 = sadd.s32 4294967295, %s4238_s18   ;;  %p2560_p0 = scmp.ge.s32.totalorder %s4238_s18, 1  ;;  %s4238_s18 = sphi %s4321_s18, %s25_s18  }
   0x2   : > { %p437_p1 = scmp.lt.s32.totalorder %s4238_s18, 3 }
   0x4   : > { %p438_p2 = pnand %p2560_p0, %p437_p1 }
   0x5   : > { %v2565_v0 = vld [vmem:[%s5236_s1 + $0x40] sm:$0xff] (!%p438_p2)  ;;  %v2566_v1 = vld [vmem:[%s5236_s1 + $0x48] sm:$0xff] (!%p438_p2)  ;;  %p485_p3 = scmp.lt.s32.totalorder (!%p438_p2), %s2556_s19, 1  ;;  %vm497_vm0 = vcmask (!%p438_p2), 516096   ;;  %v2567_v5 = vld [vmem:[%s5236_s1 + $0x50] sm:$0xff] (!%p438_p2)  ;;  %v4240_v12 = vmov (!%p438_p2), 0.0  }
   0x6   : > { %441 = sbr.rel (%p438_p2) target bundleno = 1093 (0x445), region = 80  ;;  %v507_v2 = vld [vmem:[%s5236_s1] sm:$0xff] (!%p438_p2)  ;;  %v3667_v3 = vpack.c.bf16 (!%p438_p2), %v2566_v1, %v2565_v0  ;;  %v508_v4 = vld [vmem:[%s5236_s1 + $0x8] sm:$0xff] (!%p438_p2)  ;;  %v2568_v6 = vld [vmem:[%s5236_s1 + $0x58] sm:$0xff] (!%p438_p2)  ;;  %498 = vst.msk [vmem:[#allocation2] sm:$0x1] (!%p438_p2), %vm497_vm0, %v4240_v12 }
   0x7   : > { %v3683_v7 = vpack.c.bf16 (!%p438_p2), %v508_v4, %v507_v2  ;;  %v3671_v8 = vpack.c.bf16 (!%p438_p2), %v2568_v6, %v2567_v5  ;;  %v509_v9 = vld [vmem:[%s5236_s1 + $0x10] sm:$0xff] (!%p438_p2)  ;;  %v510_v10 = vld [vmem:[%s5236_s1 + $0x18] sm:$0xff] (!%p438_p2)  ;;  %v2569_v11 = vld [vmem:[%s5236_s1 + $0x60] sm:$0xff] (!%p438_p2)  ;;  %499 = vst.msk [vmem:[#allocation2 + $0x11] sm:$0x1] (!%p438_p2), %vm497_vm0, %v4240_v12  ;;  %vm502_vm1 = vcmask (!%p438_p2), 523264  }
   0x8   : > { %501 = vst [vmem:[#allocation3 + $0x11] sm:$0x1] (!%p438_p2), %v4240_v12  ;;  %500 = vst [vmem:[#allocation3] sm:$0x1] (!%p438_p2), %v4240_v12  ;;  %3668 = vmatprep.subr.bf16.mxu1 (!%p438_p2), %v3667_v3  ;;  %v3687_v13 = vpack.c.bf16 (!%p438_p2), %v510_v10, %v509_v9  ;;  %v2570_v14 = vld [vmem:[%s5236_s1 + $0x68] sm:$0xff] (!%p438_p2)  ;;  %v511_v15 = vld [vmem:[%s5236_s1 + $0x20] sm:$0xff] (!%p438_p2) }
   0x9   : > { %v512_v16 = vld [vmem:[%s5236_s1 + $0x28] sm:$0xff] (!%p438_p2)  ;;  %3684 = vmatprep.subr.bf16.mxu0 (!%p438_p2), %v3683_v7  ;;  %3670 = vmatpush3.bf16.msra.mxu1 (!%p438_p2), %v3667_v3  ;;  %v3675_v17 = vpack.c.bf16 (!%p438_p2), %v2570_v14, %v2569_v11  ;;  %v2571_v19 = vld [vmem:[%s5236_s1 + $0x70] sm:$0xff] (!%p438_p2)  ;;  %v2572_v20 = vld [vmem:[%s5236_s1 + $0x78] sm:$0xff] (!%p438_p2) }
   0xa   : > { %3686 = vmatpush3.bf16.msra.mxu0 (!%p438_p2), %v3683_v7  ;;  %3672 = vmatprep.subr.bf16.mxu1 (!%p438_p2), %v3671_v8  ;;  %v3691_v18 = vpack.c.bf16 (!%p438_p2), %v512_v16, %v511_v15  ;;  %v513_v22 = vld [vmem:[%s5236_s1 + $0x30] sm:$0xff] (!%p438_p2)  ;;  %v514_v23 = vld [vmem:[%s5236_s1 + $0x38] sm:$0xff] (!%p438_p2)  ;;  %v3679_v25 = vpack.c.bf16 (!%p438_p2), %v2572_v20, %v2571_v19  ;;  %v2588_v27 = vld [vmem:[%s5238_s3 + $0x40] sm:$0xff] (!%p438_p2) }
   0xb   : > { %3688 = vmatprep.subr.bf16.mxu0 (!%p438_p2), %v3687_v13  ;;  %v3695_v26 = vpack.c.bf16 (!%p438_p2), %v514_v23, %v513_v22  ;;  %v2589_v28 = vld [vmem:[%s5238_s3 + $0x48] sm:$0xff] (!%p438_p2)  ;;  %v2577_v29 = vld [vmem:[%s5236_s1 + $0x80] sm:$0xff] (!%p438_p2)  ;;  %v2590_v32 = vld [vmem:[%s5238_s3 + $0x50] sm:$0xff] (!%p438_p2) }
   0xc   : > { %v2578_v30 = vld [vmem:[%s5236_s1 + $0x88] sm:$0xff] (!%p438_p2)  ;;  %v3715_v31 = vpack.c.bf16 (!%p438_p2), %v2589_v28, %v2588_v27  ;;  %v2591_v36 = vld [vmem:[%s5238_s3 + $0x58] sm:$0xff] (!%p438_p2)  ;;  %v2579_v37 = vld [vmem:[%s5236_s1 + $0x90] sm:$0xff] (!%p438_p2) }
   0xd   : > { %s5252_s19 = smov (!%p485_p3, %s2556_s19), 1  ;;  %3674 = vmatpush3.bf16.msra.mxu1 %v3671_v8  ;;  %v3699_v35 = vpack.c.bf16 %v2578_v30, %v2577_v29  ;;  %v2580_v38 = vld [vmem:[%s5236_s1 + $0x98] sm:$0xff]  ;;  %v3719_v41 = vpack.c.bf16 %v2591_v36, %v2590_v32  ;;  %v2592_v43 = vld [vmem:[%s5238_s3 + $0x60] sm:$0xff]  ;;  %v2593_v44 = vld [vmem:[%s5238_s3 + $0x68] sm:$0xff] }
   0xe   : > { %s2768_s16 = sshll.u32 %s5252_s19, 4  ;;  %3690 = vmatpush3.bf16.msra.mxu0 %v3687_v13  ;;  %3676 = vmatprep.subr.bf16.mxu1 %v3675_v17  ;;  %v3703_v42 = vpack.c.bf16 %v2580_v38, %v2579_v37  ;;  %v2581_v45 = vld [vmem:[%s5236_s1 + $0xa0] sm:$0xff]  ;;  %v2582_v46 = vld [vmem:[%s5236_s1 + $0xa8] sm:$0xff]  ;;  %v3723_v48 = vpack.c.bf16 %v2593_v44, %v2592_v43  ;;  %v2594_v50 = vld [vmem:[%s5238_s3 + $0x70] sm:$0xff] }
   0xf   : > { %s489_s21 = scalar_lea.vmem %s5235_s0, %s2768_s16  ;;  %3692 = vmatprep.subr.bf16.mxu0 %v3691_v18  ;;  %v3707_v49 = vpack.c.bf16 %v2582_v46, %v2581_v45  ;;  %v2595_v51 = vld [vmem:[%s5238_s3 + $0x78] sm:$0xff]  ;;  %v2583_v52 = vld [vmem:[%s5236_s1 + $0xb0] sm:$0xff]  ;;  %v793_v56 = vld [vmem:[%s5238_s3] sm:$0xff]  ;;  %s494_s26 = scalar_lea.vmem %s5250_s15, %s2768_s16 }
  0x10   : > { %v4379_v21 = vld [vmem:[%s489_s21] sm:$0xff]  ;;  %v4389_v24 = vld [vmem:[%s489_s21 + $0x8] sm:$0xff]  ;;  %v2584_v53 = vld [vmem:[%s5236_s1 + $0xb8] sm:$0xff]  ;;  %v3727_v54 = vpack.c.bf16 %v2595_v51, %v2594_v50 }
  0x11   : > { %503 = vst.msk [vmem:[#allocation2 + $0x1] sm:$0xff] %vm502_vm1, %v4379_v21  ;;  %504 = vst.msk [vmem:[#allocation2 + $0x9] sm:$0xff] %vm502_vm1, %v4389_v24  ;;  %3678 = vmatpush3.bf16.msra.mxu1 %v3675_v17  ;;  %v3711_v55 = vpack.c.bf16 %v2584_v53, %v2583_v52  ;;  %v794_v57 = vld [vmem:[%s5238_s3 + $0x8] sm:$0xff]  ;;  %v2611_v58 = vld [vmem:[%s5242_s7 + $0x40] sm:$0xff] }
  0x12   : > { %3694 = vmatpush3.bf16.msra.mxu0 %v3691_v18  ;;  %3680 = vmatprep.subr.bf16.mxu1 %v3679_v25  ;;  %v2612_v59 = vld [vmem:[%s5242_s7 + $0x48] sm:$0xff]  ;;  %v3731_v60 = vpack.c.bf16 %v794_v57, %v793_v56  ;;  %v795_v62 = vld [vmem:[%s5238_s3 + $0x10] sm:$0xff]  ;;  %v796_v63 = vld [vmem:[%s5238_s3 + $0x18] sm:$0xff] }
  0x13   : > { %3696 = vmatprep.subr.bf16.mxu0 %v3695_v26  ;;  %v3763_v61 = vpack.c.bf16 %v2612_v59, %v2611_v58  ;;  %v2613_v0 = vld [vmem:[%s5242_s7 + $0x50] sm:$0xff]  ;;  %v2614_v1 = vld [vmem:[%s5242_s7 + $0x58] sm:$0xff]  ;;  %v3735_v3 = vpack.c.bf16 %v796_v63, %v795_v62  ;;  %v797_v5 = vld [vmem:[%s5238_s3 + $0x20] sm:$0xff] }
  0x14   : > { %v3767_v4 = vpack.c.bf16 %v2614_v1, %v2613_v0  ;;  %v798_v6 = vld [vmem:[%s5238_s3 + $0x28] sm:$0xff]  ;;  %v2615_v7 = vld [vmem:[%s5242_s7 + $0x60] sm:$0xff]  ;;  %v799_v11 = vld [vmem:[%s5238_s3 + $0x30] sm:$0xff] }
  0x15   : > { %3682 = vmatpush3.bf16.msra.mxu1 %v3679_v25  ;;  %v2616_v8 = vld [vmem:[%s5242_s7 + $0x68] sm:$0xff]  ;;  %v3739_v9 = vpack.c.bf16 %v798_v6, %v797_v5  ;;  %v800_v12 = vld [vmem:[%s5238_s3 + $0x38] sm:$0xff]  ;;  %v2617_v13 = vld [vmem:[%s5242_s7 + $0x70] sm:$0xff] }
  0x16   : > { %3698 = vmatpush3.bf16.msra.mxu0 %v3695_v26  ;;  %3716 = vmatprep.subr.bf16.mxu1 %v3715_v31  ;;  %v3771_v10 = vpack.c.bf16 %v2616_v8, %v2615_v7  ;;  %v2618_v14 = vld [vmem:[%s5242_s7 + $0x78] sm:$0xff]  ;;  %v3743_v15 = vpack.c.bf16 %v800_v12, %v799_v11  ;;  %v2600_v17 = vld [vmem:[%s5238_s3 + $0x80] sm:$0xff]  ;;  %v2601_v18 = vld [vmem:[%s5238_s3 + $0x88] sm:$0xff] }
  0x17   : > { %3700 = vmatprep.subr.bf16.mxu0 %v3699_v35  ;;  %v3775_v16 = vpack.c.bf16 %v2618_v14, %v2617_v13  ;;  %v1057_v19 = vld [vmem:[%s5242_s7] sm:$0xff]  ;;  %v1058_v20 = vld [vmem:[%s5242_s7 + $0x8] sm:$0xff]  ;;  %v3747_v22 = vpack.c.bf16 %v2601_v18, %v2600_v17  ;;  %v2602_v25 = vld [vmem:[%s5238_s3 + $0x90] sm:$0xff] }
  0x18   : > { %v4408_v33 = vld [vmem:[#allocation2 + $0x1] sm:$0xff]  ;;  %v4425_v39 = vld [vmem:[#allocation2 + $0x9] sm:$0xff]  ;;  %v3779_v23 = vpack.c.bf16 %v1058_v20, %v1057_v19  ;;  %v2603_v26 = vld [vmem:[%s5238_s3 + $0x98] sm:$0xff] }
  0x19   : > { %v4410_v34 = vld [vmem:[#allocation2] sm:$0xff]  ;;  %3092 = vmatprep.mubr.msk.f32.mxu1 %vm502_vm1, %v4408_v33  ;;  %v4427_v40 = vld [vmem:[#allocation2 + $0x8] sm:$0xff]  ;;  %v1059_v27 = vld [vmem:[%s5242_s7 + $0x10] sm:$0xff]  ;;  %v3751_v29 = vpack.c.bf16 %v2603_v26, %v2602_v25 }
  0x1a   : > { %3111 = vmatprep.mubr.msk.f32.mxu0 %vm502_vm1, %v4410_v34  ;;  %3093 = vmatmul.mubr.msk.f32.vlgmr.msra.gmra.mrb[0].mxu1 %vm502_vm1, %v4425_v39  ;;  %v4443_v47 = vld [vmem:[#allocation2 + $0x2] sm:$0xff]  ;;  %v4487_v2 = vld [vmem:[#allocation2 + $0xa] sm:$0xff]  ;;  %v1060_v28 = vld [vmem:[%s5242_s7 + $0x18] sm:$0xff] }
  0x1b   : > { %3112 = vmatmul.mubr.msk.f32.vlgmr.msra.gmra.mrb[0].mxu0 %vm502_vm1, %v4427_v40  ;;  %3718 = vmatpush3.bf16.msra.mxu1 %v3715_v31  ;;  %v3783_v30 = vpack.c.bf16 %v1060_v28, %v1059_v27  ;;  %v2604_v31 = vld [vmem:[%s5238_s3 + $0xa0] sm:$0xff]  ;;  %v2605_v32 = vld [vmem:[%s5238_s3 + $0xa8] sm:$0xff]  ;;  %v2606_v38 = vld [vmem:[%s5238_s3 + $0xb0] sm:$0xff] }
  0x1c   : > { %3702 = vmatpush3.bf16.msra.mxu0 %v3699_v35  ;;  %3720 = vmatprep.subr.bf16.mxu1 %v3719_v41  ;;  %v1062_v35 = vld [vmem:[%s5242_s7 + $0x28] sm:$0xff]  ;;  %v3755_v36 = vpack.c.bf16 %v2605_v32, %v2604_v31  ;;  %v2623_v45 = vld [vmem:[%s5242_s7 + $0x80] sm:$0xff]  ;;  %v2636_v58 = vld [vmem:[%s5240_s5 + $0x90] sm:$0xff] }
  0x1d   : > { %3704 = vmatprep.subr.bf16.mxu0 %v3703_v42  ;;  %3130 = vmatprep.mubr.msk.f32.mxu0 %vm502_vm1, %v4443_v47  ;;  %v2624_v46 = vld [vmem:[%s5242_s7 + $0x88] sm:$0xff]  ;;  %v2627_v51 = vld [vmem:[%s5242_s7 + $0xa0] sm:$0xff]  ;;  %v2637_v59 = vld [vmem:[%s5240_s5 + $0x98] sm:$0xff] }
  0x1e   : > { %3149 = vmatprep.mubr.msk.f32.mxu1 %vm502_vm1, %v4408_v33  ;;  %v2628_v52 = vld [vmem:[%s5242_s7 + $0xa8] sm:$0xff]  ;;  %v2667_v0 = vld [vmem:[%s5244_s9 + $0x80] sm:$0xff]  ;;  %v2640_v1 = vld [vmem:[%s5240_s5 + $0xb0] sm:$0xff] }
  0x1f   : > { %3722 = vmatpush3.bf16.msra.mxu1 %v3719_v41  ;;  %v2607_v41 = vld [vmem:[%s5238_s3 + $0xb8] sm:$0xff]  ;;  %v3803_v53 = vpack.c.bf16 %v2628_v52, %v2627_v51  ;;  %v2639_v62 = vld [vmem:[%s5240_s5 + $0xa8] sm:$0xff]  ;;  %v2642_v6 = vld [vmem:[%s5240_s5 + $0xc0] sm:$0xff] }
  0x20   : > { %3706 = vmatpush3.bf16.msra.mxu0 %v3703_v42  ;;  %3724 = vmatprep.subr.bf16.mxu1 %v3723_v48  ;;  %v1064_v42 = vld [vmem:[%s5242_s7 + $0x38] sm:$0xff]  ;;  %v3759_v43 = vpack.c.bf16 %v2607_v41, %v2606_v38  ;;  %v2643_v7 = vld [vmem:[%s5240_s5 + $0xc8] sm:$0xff]  ;;  %v2669_v11 = vld [vmem:[%s5244_s9 + $0x90] sm:$0xff] }
  0x21   : > { %3708 = vmatprep.subr.bf16.mxu0 %v3707_v49  ;;  %v3827_v8 = vpack.c.bf16 %v2643_v7, %v2642_v6  ;;  %v2670_v13 = vld [vmem:[%s5244_s9 + $0x98] sm:$0xff]  ;;  %v2671_v17 = vld [vmem:[%s5244_s9 + $0xa0] sm:$0xff]  ;;  %v2672_v19 = vld [vmem:[%s5244_s9 + $0xa8] sm:$0xff] }
  0x22   : > { %v3911_v14 = vpack.c.bf16 %v2670_v13, %v2669_v11  ;;  %v3915_v20 = vpack.c.bf16 %v2672_v19, %v2671_v17  ;;  %v2673_v26 = vld [vmem:[%s5244_s9 + $0xb0] sm:$0xff]  ;;  %v2674_v27 = vld [vmem:[%s5244_s9 + $0xb8] sm:$0xff]  ;;  %v2675_v31 = vld [vmem:[%s5244_s9 + $0xc0] sm:$0xff] }
  0x23   : > { %3726 = vmatpush3.bf16.msra.mxu1 %v3723_v48  ;;  %v3795_v48 = vpack.c.bf16 %v2624_v46, %v2623_v45  ;;  %v3919_v28 = vpack.c.bf16 %v2674_v27, %v2673_v26  ;;  %v2679_v41 = vld [vmem:[%s5244_s9 + $0xe0] sm:$0xff]  ;;  %v1334_v7 = vld [vmem:[%s5240_s5 + $0x48] sm:$0xff]  ;;  %v1335_v13 = vld [vmem:[%s5240_s5 + $0x50] sm:$0xff] }
  0x24   : > { %3710 = vmatpush3.bf16.msra.mxu0 %v3707_v49  ;;  %3728 = vmatprep.subr.bf16.mxu1 %v3727_v54  ;;  %v2626_v49 = vld [vmem:[%s5242_s7 + $0x98] sm:$0xff]  ;;  %v1621_v46 = vld [vmem:[%s5244_s9] sm:$0xff] }
  0x25   : > { %3712 = vmatprep.subr.bf16.mxu0 %v3711_v55  ;;  %v1333_v6 = vld [vmem:[%s5240_s5 + $0x40] sm:$0xff]  ;;  %v1624_v17 = vld [vmem:[%s5244_s9 + $0x18] sm:$0xff] }
  0x26   : > { %v1337_v27 = vld [vmem:[%s5240_s5 + $0x60] sm:$0xff] }
  0x27   : > { %3730 = vmatpush3.bf16.msra.mxu1 %v3727_v54  ;;  %v2629_v54 = vld [vmem:[%s5242_s7 + $0xb0] sm:$0xff] }
  0x28   : > { %3714 = vmatpush3.bf16.msra.mxu0 %v3711_v55  ;;  %3732 = vmatprep.subr.bf16.mxu1 %v3731_v60  ;;  %v2630_v55 = vld [vmem:[%s5242_s7 + $0xb8] sm:$0xff] }
  0x29   : > { %3764 = vmatprep.subr.bf16.mxu0 %v3763_v61  ;;  %v3807_v56 = vpack.c.bf16 %v2630_v55, %v2629_v54  ;;  %v2610_v55 = vld [vmem:[%s5239_s4] ss:$0 sm:$0xff] }
  0x2a   : > { %3150 = vmatmul.mubr.msk.f32.vlgmr.msra.gmra.mrb[2].mxu1 %vm502_vm1, %v4425_v39 }
  0x2b   : > { %3131 = vmatmul.mubr.msk.f32.vlgmr.msra.gmra.mrb[0].mxu0 %vm502_vm1, %v4487_v2  ;;  %3734 = vmatpush3.bf16.msra.mxu1 %v3731_v60  ;;  %v2638_v60 = vld [vmem:[%s5240_s5 + $0xa0] sm:$0xff] }
  0x2c   : > { %3766 = vmatpush3.bf16.msra.mxu0 %v3763_v61  ;;  %3736 = vmatprep.subr.bf16.mxu1 %v3735_v3  ;;  %v3815_v61 = vpack.c.bf16 %v2637_v59, %v2636_v58  ;;  %v3819_v63 = vpack.c.bf16 %v2639_v62, %v2638_v60  ;;  %v1327_v58 = vld [vmem:[%s5240_s5 + $0x10] sm:$0xff]  ;;  %v1328_v59 = vld [vmem:[%s5240_s5 + $0x18] sm:$0xff] }
  0x2d   : > { %3768 = vmatprep.subr.bf16.mxu0 %v3767_v4  ;;  %3168 = vmatprep.mubr.msk.f32.mxu1 %vm502_vm1, %v4410_v34  ;;  %v3847_v62 = vpack.c.bf16 %v1328_v59, %v1327_v58 }
  0x2e   : > { %3206 = vmatprep.mubr.msk.f32.mxu0 %vm502_vm1, %v4408_v33  ;;  %v1061_v33 = vld [vmem:[%s5242_s7 + $0x20] sm:$0xff] }
  0x2f   : > { %3738 = vmatpush3.bf16.msra.mxu1 %v3735_v3  ;;  %v3787_v37 = vpack.c.bf16 %v1062_v35, %v1061_v33  ;;  %v2668_v3 = vld [vmem:[%s5244_s9 + $0x88] sm:$0xff] }
  0x30   : > { %3770 = vmatpush3.bf16.msra.mxu0 %v3767_v4  ;;  %3740 = vmatprep.subr.bf16.mxu1 %v3739_v9  ;;  %v3907_v4 = vpack.c.bf16 %v2668_v3, %v2667_v0  ;;  %v2676_v33 = vld [vmem:[%s5244_s9 + $0xc8] sm:$0xff]  ;;  %v1332_v3 = vld [vmem:[%s5240_s5 + $0x38] sm:$0xff] }
  0x31   : > { %3772 = vmatprep.subr.bf16.mxu0 %v3771_v10  ;;  %v3923_v35 = vpack.c.bf16 %v2676_v33, %v2675_v31  ;;  %v1330_v0 = vld [vmem:[%s5240_s5 + $0x28] sm:$0xff]  ;;  %v1339_v33 = vld [vmem:[%s5240_s5 + $0x70] sm:$0xff] }
  0x33   : > { %3742 = vmatpush3.bf16.msra.mxu1 %v3739_v9  ;;  %v2644_v9 = vld [vmem:[%s5240_s5 + $0xd0] sm:$0xff] }
  0x34   : > { %3774 = vmatpush3.bf16.msra.mxu0 %v3771_v10  ;;  %3744 = vmatprep.subr.bf16.mxu1 %v3743_v15  ;;  %v2645_v10 = vld [vmem:[%s5240_s5 + $0xd8] sm:$0xff] }
  0x35   : > { %3776 = vmatprep.subr.bf16.mxu0 %v3775_v16  ;;  %v3831_v12 = vpack.c.bf16 %v2645_v10, %v2644_v9  ;;  %v3859_v10 = vpack.c.bf16 %v1334_v7, %v1333_v6 }
  0x37   : > { %3746 = vmatpush3.bf16.msra.mxu1 %v3743_v15  ;;  %v2646_v15 = vld [vmem:[%s5240_s5 + $0xe0] sm:$0xff] }
  0x38   : > { %3778 = vmatpush3.bf16.msra.mxu0 %v3775_v16  ;;  %3748 = vmatprep.subr.bf16.mxu1 %v3747_v22  ;;  %v2647_v16 = vld [vmem:[%s5240_s5 + $0xe8] sm:$0xff] }
  0x39   : > { %3780 = vmatprep.subr.bf16.mxu0 %v3779_v23  ;;  %v3835_v18 = vpack.c.bf16 %v2647_v16, %v2646_v15  ;;  %v1623_v16 = vld [vmem:[%s5244_s9 + $0x10] sm:$0xff] }
  0x3a   : > { %3169 = vmatmul.mubr.msk.f32.vlgmr.msra.gmra.mrb[2].mxu1 %vm502_vm1, %v4427_v40  ;;  %v3943_v26 = vpack.c.bf16 %v1624_v17, %v1623_v16  ;;  %v2687_v17 = vld [vmem:[%s5244_s9 + $0x120] sm:$0xff] }
  0x3b   : > { %3750 = vmatpush3.bf16.msra.mxu1 %v3747_v22  ;;  %3207 = vmatmul.mubr.msk.f32.vlgmr.msra.gmra.mrb[2].mxu0 %vm502_vm1, %v4425_v39  ;;  %v1063_v39 = vld [vmem:[%s5242_s7 + $0x30] sm:$0xff] }
  0x3c   : > { %3782 = vmatpush3.bf16.msra.mxu0 %v3779_v23  ;;  %3752 = vmatprep.subr.bf16.mxu1 %v3751_v29  ;;  %v3791_v44 = vpack.c.bf16 %v1064_v42, %v1063_v39  ;;  %v2648_v22 = vld [vmem:[%s5240_s5 + $0xf0] sm:$0xff]  ;;  %v2649_v23 = vld [vmem:[%s5240_s5 + $0xf8] sm:$0xff]  ;;  %v2680_v39 = vld [vmem:[%s5244_s9 + $0xe8] sm:$0xff] }
  0x3d   : > { %3784 = vmatprep.subr.bf16.mxu0 %v3783_v30  ;;  %3187 = vmatprep.mubr.msk.f32.mxu1 %vm502_vm1, %v4443_v47  ;;  %v3839_v25 = vpack.c.bf16 %v2649_v23, %v2648_v22  ;;  %v3931_v42 = vpack.c.bf16 %v2680_v39, %v2679_v41 }
  0x3e   : > { %3225 = vmatprep.mubr.msk.f32.mxu0 %vm502_vm1, %v4410_v34  ;;  %v2625_v34 = vld [vmem:[%s5242_s7 + $0x90] sm:$0xff] }
  0x3f   : > { %3754 = vmatpush3.bf16.msra.mxu1 %v3751_v29  ;;  %v3799_v50 = vpack.c.bf16 %v2626_v49, %v2625_v34  ;;  %v1325_v29 = vld [vmem:[%s5240_s5] sm:$0xff] }
  0x40   : > { %3786 = vmatpush3.bf16.msra.mxu0 %v3783_v30  ;;  %3756 = vmatprep.subr.bf16.mxu1 %v3755_v36  ;;  %v1326_v30 = vld [vmem:[%s5240_s5 + $0x8] sm:$0xff] }
  0x41   : > { %3788 = vmatprep.subr.bf16.mxu0 %v3787_v37  ;;  %v3843_v32 = vpack.c.bf16 %v1326_v30, %v1325_v29  ;;  %v1625_v29 = vld [vmem:[%s5244_s9 + $0x20] sm:$0xff]  ;;  %v1626_v30 = vld [vmem:[%s5244_s9 + $0x28] sm:$0xff] }
  0x43   : > { %3758 = vmatpush3.bf16.msra.mxu1 %v3755_v36  ;;  %v2677_v36 = vld [vmem:[%s5244_s9 + $0xd0] sm:$0xff] }
  0x44   : > { %3790 = vmatpush3.bf16.msra.mxu0 %v3787_v37  ;;  %3760 = vmatprep.subr.bf16.mxu1 %v3759_v43  ;;  %v2678_v37 = vld [vmem:[%s5244_s9 + $0xd8] sm:$0xff] }
  0x45   : > { %3792 = vmatprep.subr.bf16.mxu0 %v3791_v44  ;;  %v3927_v38 = vpack.c.bf16 %v2678_v37, %v2677_v36  ;;  %v1627_v36 = vld [vmem:[%s5244_s9 + $0x30] sm:$0xff]  ;;  %v1628_v37 = vld [vmem:[%s5244_s9 + $0x38] sm:$0xff] }
  0x46   : > { %v3951_v39 = vpack.c.bf16 %v1628_v37, %v1627_v36 }
  0x47   : > { %3762 = vmatpush3.bf16.msra.mxu1 %v3759_v43  ;;  %v2681_v43 = vld [vmem:[%s5244_s9 + $0xf0] sm:$0xff] }
  0x48   : > { %3794 = vmatpush3.bf16.msra.mxu0 %v3791_v44  ;;  %v2682_v44 = vld [vmem:[%s5244_s9 + $0xf8] sm:$0xff] }
  0x49   : > { %3796 = vmatprep.subr.bf16.mxu0 %v3795_v48  ;;  %v3935_v45 = vpack.c.bf16 %v2682_v44, %v2681_v43  ;;  %v2651_v43 = vld [vmem:[%s5240_s5 + $0x108] sm:$0xff]  ;;  %v1629_v44 = vld [vmem:[%s5244_s9 + $0x40] sm:$0xff] }
  0x4a   : > { %3188 = vmatmul.mubr.msk.f32.vlgmr.msra.gmra.mrb[2].mxu1 %vm502_vm1, %v4487_v2 }
  0x4b   : > { %3226 = vmatmul.mubr.msk.f32.vlgmr.msra.gmra.mrb[2].mxu0 %vm502_vm1, %v4427_v40  ;;  %v2634_v40 = vld [vmem:[%s5240_s5 + $0x80] sm:$0xff] }
  0x4c   : > { %3798 = vmatpush3.bf16.msra.mxu0 %v3795_v48  ;;  %3244 = vmatprep.mubr.msk.f32.mxu0 %vm502_vm1, %v4443_v47  ;;  %v2635_v47 = vld [vmem:[%s5240_s5 + $0x88] sm:$0xff] }
  0x4d   : > { %3800 = vmatprep.subr.bf16.mxu0 %v3799_v50  ;;  %v3811_v57 = vpack.c.bf16 %v2635_v47, %v2634_v40  ;;  %v1622_v48 = vld [vmem:[%s5244_s9 + $0x8] sm:$0xff] }
  0x4e   : > { %v4717_v34 = vpack.c.bf16 %v1622_v48, %v1621_v46 }
  0x4f   : > { %3812 = vmatprep.subr.bf16.mxu1 %v3811_v57 }
  0x50   : > { %3802 = vmatpush3.bf16.msra.mxu0 %v3799_v50  ;;  %3814 = vmatpush3.bf16.msra.mxu1 %v3811_v57 }
  0x51   : > { %3804 = vmatprep.subr.bf16.mxu0 %v3803_v53  ;;  %3816 = vmatprep.subr.bf16.mxu1 %v3815_v61 }
  0x54   : > { %3806 = vmatpush3.bf16.msra.mxu0 %v3803_v53  ;;  %3818 = vmatpush3.bf16.msra.mxu1 %v3815_v61 }
  0x55   : > { %3808 = vmatprep.subr.bf16.mxu0 %v3807_v56  ;;  %3820 = vmatprep.subr.bf16.mxu1 %v3819_v63 }
  0x58   : > { %3810 = vmatpush3.bf16.msra.mxu0 %v3807_v56  ;;  %3822 = vmatpush3.bf16.msra.mxu1 %v3819_v63  ;;  %v1329_v63 = vld [vmem:[%s5240_s5 + $0x20] sm:$0xff] }
  0x59   : > { %3908 = vmatprep.subr.bf16.mxu0 %v3907_v4 }
  0x5b   : > { %3245 = vmatmul.mubr.msk.f32.vlgmr.msra.gmra.mrb[2].mxu0 %vm502_vm1, %v4487_v2  ;;  %v2641_v2 = vld [vmem:[%s5240_s5 + $0xb8] sm:$0xff] }
  0x5c   : > { %v3823_v5 = vpack.c.bf16 %v2641_v2, %v2640_v1  ;;  %3910 = vmatpush3.bf16.msra.mxu0 %v3907_v4  ;;  %v3851_v1 = vpack.c.bf16 %v1330_v0, %v1329_v63  ;;  %v1331_v2 = vld [vmem:[%s5240_s5 + $0x30] sm:$0xff]  ;;  %v1636_v63 = vld [vmem:[%s5244_s9 + $0x78] sm:$0xff] }
  0x5d   : > { %3912 = vmatprep.subr.bf16.mxu0 %v3911_v14 }
  0x5e   : > { %3824 = vmatprep.subr.bf16.mxu1 %v3823_v5 }
  0x5f   : > { %3826 = vmatpush3.bf16.msra.mxu1 %v3823_v5  ;;  %v3855_v5 = vpack.c.bf16 %v1332_v3, %v1331_v2  ;;  %v2658_v2 = vld [vmem:[%s5240_s5 + $0x140] sm:$0xff]  ;;  %v2659_v3 = vld [vmem:[%s5240_s5 + $0x148] sm:$0xff] }
  0x60   : > { %3828 = vmatprep.subr.bf16.mxu1 %v3827_v8  ;;  %3914 = vmatpush3.bf16.msra.mxu0 %v3911_v14  ;;  %v1336_v14 = vld [vmem:[%s5240_s5 + $0x58] sm:$0xff]  ;;  %v3891_v6 = vpack.c.bf16 %v2659_v3, %v2658_v2  ;;  %v2745_v2 = vld [vmem:[%s5248_s13 + $0xe0] sm:$0xff]  ;;  %v2746_v3 = vld [vmem:[%s5248_s13 + $0xe8] sm:$0xff] }
  0x61   : > { %3916 = vmatprep.subr.bf16.mxu0 %v3915_v20 }
  0x63   : > { %3830 = vmatpush3.bf16.msra.mxu1 %v3827_v8  ;;  %v2633_v8 = vld [vmem:[%s5243_s8] ss:$0 sm:$0xff] }
  0x64   : > { %3832 = vmatprep.subr.bf16.mxu1 %v3831_v12  ;;  %3918 = vmatpush3.bf16.msra.mxu0 %v3915_v20 }
  0x65   : > { %3920 = vmatprep.subr.bf16.mxu0 %v3919_v28 }
  0x67   : > { %3834 = vmatpush3.bf16.msra.mxu1 %v3831_v12 }
  0x68   : > { %3836 = vmatprep.subr.bf16.mxu1 %v3835_v18  ;;  %3922 = vmatpush3.bf16.msra.mxu0 %v3919_v28  ;;  %v1338_v28 = vld [vmem:[%s5240_s5 + $0x68] sm:$0xff] }
  0x69   : > { %3924 = vmatprep.subr.bf16.mxu0 %v3923_v35  ;;  %v3867_v31 = vpack.c.bf16 %v1338_v28, %v1337_v27  ;;  %v2689_v27 = vld [vmem:[%s5244_s9 + $0x130] sm:$0xff]  ;;  %v2690_v28 = vld [vmem:[%s5244_s9 + $0x138] sm:$0xff] }
  0x6b   : > { %3838 = vmatpush3.bf16.msra.mxu1 %v3835_v18 }
  0x6c   : > { %3840 = vmatprep.subr.bf16.mxu1 %v3839_v25  ;;  %3926 = vmatpush3.bf16.msra.mxu0 %v3923_v35  ;;  %v1340_v35 = vld [vmem:[%s5240_s5 + $0x78] sm:$0xff] }
  0x6d   : > { %3928 = vmatprep.subr.bf16.mxu0 %v3927_v38 }
  0x6f   : > { %3842 = vmatpush3.bf16.msra.mxu1 %v3839_v25  ;;  %v3863_v25 = vpack.c.bf16 %v1336_v14, %v1335_v13  ;;  %v2662_v14 = vld [vmem:[%s5240_s5 + $0x160] sm:$0xff] }
  0x70   : > { %3844 = vmatprep.subr.bf16.mxu1 %v3843_v32  ;;  %3930 = vmatpush3.bf16.msra.mxu0 %v3927_v38  ;;  %v3871_v38 = vpack.c.bf16 %v1340_v35, %v1339_v33  ;;  %v2691_v33 = vld [vmem:[%s5244_s9 + $0x140] sm:$0xff]  ;;  %v2692_v35 = vld [vmem:[%s5244_s9 + $0x148] sm:$0xff] }
  0x71   : > { %3932 = vmatprep.subr.bf16.mxu0 %v3931_v42  ;;  %v3987_v37 = vpack.c.bf16 %v2692_v35, %v2691_v33  ;;  %v2715_v33 = vld [vmem:[%s5246_s11 + $0xf8] sm:$0xff] }
  0x74   : > { %3934 = vmatpush3.bf16.msra.mxu0 %v3931_v42  ;;  %v2650_v42 = vld [vmem:[%s5240_s5 + $0x100] sm:$0xff] }
  0x75   : > { %3936 = vmatprep.subr.bf16.mxu0 %v3935_v45  ;;  %v3875_v46 = vpack.c.bf16 %v2651_v43, %v2650_v42  ;;  %v2695_v42 = vld [vmem:[%s5244_s9 + $0x160] sm:$0xff]  ;;  %v2696_v43 = vld [vmem:[%s5244_s9 + $0x168] sm:$0xff] }
  0x78   : > { %3938 = vmatpush3.bf16.msra.mxu0 %v3935_v45  ;;  %v1630_v45 = vld [vmem:[%s5244_s9 + $0x48] sm:$0xff] }
  0x79   : > { %3940 = vmatprep.subr.bf16.mxu0 %v4717_v34  ;;  %v3955_v48 = vpack.c.bf16 %v1630_v45, %v1629_v44  ;;  %v3995_v44 = vpack.c.bf16 %v2696_v43, %v2695_v42  ;;  %v2697_v45 = vld [vmem:[%s5244_s9 + $0x170] sm:$0xff] }
  0xed   : > { %v3094_v49 = vpop.f32.mrb[0].mxu1 }
  0xee   : > { %v598_v50 = vpop.f32.mrb[1].mxu1 }
  0xfe   : > { %v3132_v51 = vpop.f32.mrb[0].mxu0 }
  0xff   : > { %v4720_v52 = vadd.f32 %v3132_v51, %v3094_v49  ;;  %v771_v53 = vpop.f32.mrb[1].mxu0  ;;  %v2653_v49 = vld [vmem:[%s5240_s5 + $0x118] sm:$0xff] }
 0x100   : > { %v4722_v54 = vadd.f32 %v771_v53, %v598_v50  ;;  %v1631_v50 = vld [vmem:[%s5244_s9 + $0x50] sm:$0xff]  ;;  %v1632_v51 = vld [vmem:[%s5244_s9 + $0x58] sm:$0xff] }
 0x11d   : > { %v3189_v56 = vpop.f32.mrb[2].mxu1 }
 0x11e   : > { %v1054_v40 = vadd.f32 %v3189_v56, %v2610_v55  ;;  %v1035_v47 = vpop.f32.mrb[3].mxu1  ;;  %v2654_v56 = vld [vmem:[%s5240_s5 + $0x120] sm:$0xff] }
 0x11f   : > { %v1053_v57 = vadd.f32 %v2610_v55, %v1035_v47  ;;  %v3959_v55 = vpack.c.bf16 %v1632_v51, %v1631_v50  ;;  %v1633_v47 = vld [vmem:[%s5244_s9 + $0x60] sm:$0xff]  ;;  %v2735_v50 = vld [vmem:[%s5248_s13 + $0x90] sm:$0xff]  ;;  %v2736_v51 = vld [vmem:[%s5248_s13 + $0x98] sm:$0xff] }
 0x120   : > { %v1056_v60 = vmax.f32 %v1054_v40, 0.0  ;;  %v2655_v40 = vld [vmem:[%s5240_s5 + $0x128] sm:$0xff] }
 0x121   : > { %v1055_v61 = vmax.f32 %v1053_v57, 0.0  ;;  %v1634_v57 = vld [vmem:[%s5244_s9 + $0x68] sm:$0xff]  ;;  %v3883_v58 = vpack.c.bf16 %v2655_v40, %v2654_v56  ;;  %v2737_v56 = vld [vmem:[%s5248_s13 + $0xa0] sm:$0xff] }
 0x122   : > { %1322 = vst [vmem:[#allocation3 + $0x9] sm:$0xff] %v1056_v60  ;;  %v3963_v59 = vpack.c.bf16 %v1634_v57, %v1633_v47  ;;  %v2738_v40 = vld [vmem:[%s5248_s13 + $0xa8] sm:$0xff]  ;;  %v2739_v57 = vld [vmem:[%s5248_s13 + $0xb0] sm:$0xff] }
 0x123   : > { %1321 = vst [vmem:[#allocation3 + $0x1] sm:$0xff] %v1055_v61  ;;  %3279 = vmatprep.mubr.f32.mxu1 %v1055_v61  ;;  %v2657_v61 = vld [vmem:[%s5240_s5 + $0x138] sm:$0xff]  ;;  %v4107_v47 = vpack.c.bf16 %v2738_v40, %v2737_v56  ;;  %v2215_v56 = vld [vmem:[%s5248_s13 + $0x30] sm:$0xff] }
 0x124   : > { %3280 = vmatmul.mubr.f32.vlgmr.msra.gmra.mrb[4].mxu1 %v1056_v60  ;;  %v2656_v60 = vld [vmem:[%s5240_s5 + $0x130] sm:$0xff]  ;;  %v2216_v40 = vld [vmem:[%s5248_s13 + $0x38] sm:$0xff] }
 0x125   : > { %3846 = vmatpush3.bf16.msra.mxu1 %v3843_v32  ;;  %v3947_v32 = vpack.c.bf16 %v1626_v30, %v1625_v29  ;;  %v3887_v0 = vpack.c.bf16 %v2657_v61, %v2656_v60  ;;  %v3983_v30 = vpack.c.bf16 %v2690_v28, %v2689_v27  ;;  %v2741_v60 = vld [vmem:[%s5248_s13 + $0xc0] sm:$0xff]  ;;  %v2742_v61 = vld [vmem:[%s5248_s13 + $0xc8] sm:$0xff]  ;;  %v2711_v27 = vld [vmem:[%s5246_s11 + $0xd8] sm:$0xff] }
 0x126   : > { %3848 = vmatprep.subr.bf16.mxu1 %v3847_v62 }
 0x129   : > { %3850 = vmatpush3.bf16.msra.mxu1 %v3847_v62  ;;  %v4766_v22 = vld [vmem:[#allocation3 + $0xa] sm:$0xff]  ;;  %v1635_v62 = vld [vmem:[%s5244_s9 + $0x70] sm:$0xff] }
 0x12a   : > { %v1323_v4 = vld [vmem:[#allocation3] sm:$0xff]  ;;  %3852 = vmatprep.subr.bf16.mxu1 %v3851_v1  ;;  %v1324_v19 = vld [vmem:[#allocation3 + $0x8] sm:$0xff] }
 0x12b   : > { %3314 = vmatprep.mubr.f32.mxu1 %v1323_v4  ;;  %v1510_v20 = vld [vmem:[#allocation3 + $0x2] sm:$0xff] }
 0x12c   : > { %v2683_v4 = vld [vmem:[%s5244_s9 + $0x100] sm:$0xff] }
 0x12d   : > { %3854 = vmatpush3.bf16.msra.mxu1 %v3851_v1  ;;  %v3967_v1 = vpack.c.bf16 %v1636_v63, %v1635_v62  ;;  %v4115_v62 = vpack.c.bf16 %v2742_v61, %v2741_v60  ;;  %v2743_v63 = vld [vmem:[%s5248_s13 + $0xd0] sm:$0xff] }
 0x12e   : > { %v3246_v9 = vpop.f32.mrb[2].mxu0  ;;  %3856 = vmatprep.subr.bf16.mxu1 %v3855_v5 }
 0x12f   : > { %v1318_v11 = vadd.f32 %v3246_v9, %v2633_v8  ;;  %v1299_v12 = vpop.f32.mrb[3].mxu0  ;;  %v2661_v9 = vld [vmem:[%s5240_s5 + $0x158] sm:$0xff] }
 0x130   : > { %v1317_v15 = vadd.f32 %v2633_v8, %v1299_v12  ;;  %v2660_v8 = vld [vmem:[%s5240_s5 + $0x150] sm:$0xff] }
 0x131   : > { %v1320_v18 = vmax.f32 %v1318_v11, 0.0  ;;  %3858 = vmatpush3.bf16.msra.mxu1 %v3855_v5  ;;  %v2684_v5 = vld [vmem:[%s5244_s9 + $0x108] sm:$0xff]  ;;  %v2686_v11 = vld [vmem:[%s5244_s9 + $0x118] sm:$0xff]  ;;  %v3895_v12 = vpack.c.bf16 %v2661_v9, %v2660_v8  ;;  %v2704_v8 = vld [vmem:[%s5246_s11 + $0xa0] sm:$0xff] }
 0x132   : > { %v1319_v23 = vmax.f32 %v1317_v15, 0.0  ;;  %3860 = vmatprep.subr.bf16.mxu1 %v3859_v10  ;;  %v3971_v7 = vpack.c.bf16 %v2684_v5, %v2683_v4  ;;  %v2663_v15 = vld [vmem:[%s5240_s5 + $0x168] sm:$0xff]  ;;  %v4123_v4 = vpack.c.bf16 %v2746_v3, %v2745_v2  ;;  %v2702_v5 = vld [vmem:[%s5246_s11 + $0x90] sm:$0xff] }
 0x133   : > { %1618 = vst [vmem:[#allocation3 + $0x9] sm:$0xff] %v1320_v18  ;;  %v2705_v9 = vld [vmem:[%s5246_s11 + $0xa8] sm:$0xff]  ;;  %v1919_v3 = vld [vmem:[%s5246_s11 + $0x10] sm:$0xff] }
 0x134   : > { %1617 = vst [vmem:[#allocation3 + $0x1] sm:$0xff] %v1319_v23  ;;  %3384 = vmatprep.mubr.f32.mxu0 %v1319_v23 }
 0x135   : > { %3862 = vmatpush3.bf16.msra.mxu1 %v3859_v10  ;;  %3385 = vmatmul.mubr.f32.vlgmr.msra.gmra.mrb[4].mxu0 %v1320_v18  ;;  %v2685_v10 = vld [vmem:[%s5244_s9 + $0x110] sm:$0xff]  ;;  %v2688_v18 = vld [vmem:[%s5244_s9 + $0x128] sm:$0xff] }
 0x136   : > { %3942 = vmatpush3.bf16.msra.mxu0 %v4717_v34  ;;  %3864 = vmatprep.subr.bf16.mxu1 %v3863_v25  ;;  %v2652_v34 = vld [vmem:[%s5240_s5 + $0x110] sm:$0xff]  ;;  %v3975_v13 = vpack.c.bf16 %v2686_v11, %v2685_v10  ;;  %v3979_v23 = vpack.c.bf16 %v2688_v18, %v2687_v17  ;;  %v4011_v10 = vpack.c.bf16 %v2705_v9, %v2704_v8  ;;  %v2209_v17 = vld [vmem:[%s5248_s13] sm:$0xff]  ;;  %v2210_v18 = vld [vmem:[%s5248_s13 + $0x8] sm:$0xff] }
 0x137   : > { %3944 = vmatprep.subr.bf16.mxu0 %v3943_v26  ;;  %v3879_v53 = vpack.c.bf16 %v2653_v49, %v2652_v34  ;;  %v2734_v34 = vld [vmem:[%s5248_s13 + $0x88] sm:$0xff]  ;;  %v2747_v11 = vld [vmem:[%s5248_s13 + $0xf0] sm:$0xff]  ;;  %v2221_v8 = vld [vmem:[%s5248_s13 + $0x60] sm:$0xff] }
 0x138   : > { %v2222_v9 = vld [vmem:[%s5248_s13 + $0x68] sm:$0xff] }
 0x139   : > { %3866 = vmatpush3.bf16.msra.mxu1 %v3863_v25  ;;  %v2664_v25 = vld [vmem:[%s5240_s5 + $0x170] sm:$0xff] }
 0x13a   : > { %3946 = vmatpush3.bf16.msra.mxu0 %v3943_v26  ;;  %3868 = vmatprep.subr.bf16.mxu1 %v3867_v31  ;;  %v2665_v26 = vld [vmem:[%s5240_s5 + $0x178] sm:$0xff] }
 0x13b   : > { %v1619_v41 = vld [vmem:[#allocation3] sm:$0xff]  ;;  %3948 = vmatprep.subr.bf16.mxu0 %v3947_v32  ;;  %v1620_v16 = vld [vmem:[#allocation3 + $0x8] sm:$0xff]  ;;  %v3903_v29 = vpack.c.bf16 %v2665_v26, %v2664_v25  ;;  %v2710_v26 = vld [vmem:[%s5246_s11 + $0xd0] sm:$0xff] }
 0x13c   : > { %3419 = vmatprep.mubr.f32.mxu0 %v1619_v41  ;;  %v2694_v41 = vld [vmem:[%s5244_s9 + $0x158] sm:$0xff]  ;;  %v4023_v28 = vpack.c.bf16 %v2711_v27, %v2710_v26  ;;  %v2750_v26 = vld [vmem:[%s5248_s13 + $0x108] sm:$0xff]  ;;  %v1925_v27 = vld [vmem:[%s5246_s11 + $0x40] sm:$0xff] }
 0x13d   : > { %3870 = vmatpush3.bf16.msra.mxu1 %v3867_v31  ;;  %v2700_v31 = vld [vmem:[%s5246_s11 + $0x80] sm:$0xff] }
 0x13e   : > { %3950 = vmatpush3.bf16.msra.mxu0 %v3947_v32  ;;  %3872 = vmatprep.subr.bf16.mxu1 %v3871_v38  ;;  %v2701_v32 = vld [vmem:[%s5246_s11 + $0x88] sm:$0xff] }
 0x13f   : > { %3952 = vmatprep.subr.bf16.mxu0 %v3951_v39  ;;  %v4003_v36 = vpack.c.bf16 %v2701_v32, %v2700_v31  ;;  %v2714_v32 = vld [vmem:[%s5246_s11 + $0xf0] sm:$0xff] }
 0x140   : > { %v4031_v35 = vpack.c.bf16 %v2715_v33, %v2714_v32  ;;  %v2751_v32 = vld [vmem:[%s5248_s13 + $0x110] sm:$0xff]  ;;  %v2752_v33 = vld [vmem:[%s5248_s13 + $0x118] sm:$0xff] }
 0x141   : > { %3874 = vmatpush3.bf16.msra.mxu1 %v3871_v38  ;;  %v2693_v38 = vld [vmem:[%s5244_s9 + $0x150] sm:$0xff] }
 0x142   : > { %3954 = vmatpush3.bf16.msra.mxu0 %v3951_v39  ;;  %3876 = vmatprep.subr.bf16.mxu1 %v3875_v46  ;;  %v3991_v39 = vpack.c.bf16 %v2694_v41, %v2693_v38  ;;  %v2666_v41 = vld [vmem:[%s5241_s6] ss:$0 sm:$0xff] }
 0x143   : > { %3956 = vmatprep.subr.bf16.mxu0 %v3955_v48 }
 0x144   : > { %3315 = vmatmul.mubr.f32.vlgmr.msra.gmra.mrb[4].mxu1 %v1324_v19  ;;  %v1806_v19 = vld [vmem:[#allocation3 + $0x2] sm:$0xff] }
 0x145   : > { %3878 = vmatpush3.bf16.msra.mxu1 %v3875_v46  ;;  %3349 = vmatprep.mubr.f32.mxu1 %v1510_v20  ;;  %v3899_v20 = vpack.c.bf16 %v2663_v15, %v2662_v14  ;;  %v2706_v14 = vld [vmem:[%s5246_s11 + $0xb0] sm:$0xff]  ;;  %v2707_v15 = vld [vmem:[%s5246_s11 + $0xb8] sm:$0xff] }
 0x146   : > { %3958 = vmatpush3.bf16.msra.mxu0 %v3955_v48  ;;  %3880 = vmatprep.subr.bf16.mxu1 %v3879_v53  ;;  %v2733_v48 = vld [vmem:[%s5248_s13 + $0x80] sm:$0xff] }
 0x147   : > { %3960 = vmatprep.subr.bf16.mxu0 %v3959_v55  ;;  %v4099_v49 = vpack.c.bf16 %v2734_v34, %v2733_v48  ;;  %v2212_v48 = vld [vmem:[%s5248_s13 + $0x18] sm:$0xff] }
 0x149   : > { %3882 = vmatpush3.bf16.msra.mxu1 %v3879_v53  ;;  %v4103_v53 = vpack.c.bf16 %v2736_v51, %v2735_v50 }
 0x14a   : > { %3962 = vmatpush3.bf16.msra.mxu0 %v3959_v55  ;;  %3884 = vmatprep.subr.bf16.mxu1 %v3883_v58  ;;  %v1807_v55 = vld [vmem:[#allocation3 + $0xa] sm:$0xff] }
 0x14b   : > { %3964 = vmatprep.subr.bf16.mxu0 %v3963_v59 }
 0x14d   : > { %3886 = vmatpush3.bf16.msra.mxu1 %v3883_v58  ;;  %v2740_v58 = vld [vmem:[%s5248_s13 + $0xb8] sm:$0xff] }
 0x14e   : > { %3966 = vmatpush3.bf16.msra.mxu0 %v3963_v59  ;;  %3888 = vmatprep.subr.bf16.mxu1 %v3887_v0  ;;  %v4111_v59 = vpack.c.bf16 %v2740_v58, %v2739_v57  ;;  %v2217_v57 = vld [vmem:[%s5248_s13 + $0x40] sm:$0xff]  ;;  %v2218_v58 = vld [vmem:[%s5248_s13 + $0x48] sm:$0xff] }
 0x14f   : > { %3968 = vmatprep.subr.bf16.mxu0 %v3967_v1  ;;  %v4147_v61 = vpack.c.bf16 %v2218_v58, %v2217_v57  ;;  %v2719_v57 = vld [vmem:[%s5246_s11 + $0x118] sm:$0xff]  ;;  %v2759_v58 = vld [vmem:[%s5248_s13 + $0x150] sm:$0xff] }
 0x151   : > { %3890 = vmatpush3.bf16.msra.mxu1 %v3887_v0  ;;  %v2744_v0 = vld [vmem:[%s5248_s13 + $0xd8] sm:$0xff] }
 0x152   : > { %3970 = vmatpush3.bf16.msra.mxu0 %v3967_v1  ;;  %3892 = vmatprep.subr.bf16.mxu1 %v3891_v6  ;;  %v4119_v1 = vpack.c.bf16 %v2744_v0, %v2743_v63  ;;  %v2219_v0 = vld [vmem:[%s5248_s13 + $0x50] sm:$0xff] }
 0x153   : > { %3972 = vmatprep.subr.bf16.mxu0 %v3971_v7 }
 0x155   : > { %3420 = vmatmul.mubr.f32.vlgmr.msra.gmra.mrb[4].mxu0 %v1620_v16  ;;  %3894 = vmatpush3.bf16.msra.mxu1 %v3891_v6  ;;  %v2703_v6 = vld [vmem:[%s5246_s11 + $0x98] sm:$0xff]  ;;  %v4015_v16 = vpack.c.bf16 %v2707_v15, %v2706_v14  ;;  %v2223_v14 = vld [vmem:[%s5248_s13 + $0x70] sm:$0xff] }
 0x156   : > { %3974 = vmatpush3.bf16.msra.mxu0 %v3971_v7  ;;  %3454 = vmatprep.mubr.f32.mxu0 %v1806_v19  ;;  %v4007_v7 = vpack.c.bf16 %v2703_v6, %v2702_v5  ;;  %v2708_v19 = vld [vmem:[%s5246_s11 + $0xc0] sm:$0xff]  ;;  %v2224_v15 = vld [vmem:[%s5248_s13 + $0x78] sm:$0xff] }
 0x157   : > { %3896 = vmatprep.subr.bf16.mxu1 %v3895_v12  ;;  %3976 = vmatprep.subr.bf16.mxu0 %v3975_v13 }
 0x159   : > { %3898 = vmatpush3.bf16.msra.mxu1 %v3895_v12  ;;  %v2748_v12 = vld [vmem:[%s5248_s13 + $0xf8] sm:$0xff] }
 0x15a   : > { %3978 = vmatpush3.bf16.msra.mxu0 %v3975_v13  ;;  %3900 = vmatprep.subr.bf16.mxu1 %v3899_v20  ;;  %v4127_v13 = vpack.c.bf16 %v2748_v12, %v2747_v11  ;;  %v1921_v11 = vld [vmem:[%s5246_s11 + $0x20] sm:$0xff]  ;;  %v1922_v12 = vld [vmem:[%s5246_s11 + $0x28] sm:$0xff] }
 0x15b   : > { %3980 = vmatprep.subr.bf16.mxu0 %v3979_v23 }
 0x15d   : > { %3902 = vmatpush3.bf16.msra.mxu1 %v3899_v20  ;;  %v4131_v20 = vpack.c.bf16 %v2210_v18, %v2209_v17  ;;  %v1923_v17 = vld [vmem:[%s5246_s11 + $0x30] sm:$0xff]  ;;  %v1924_v18 = vld [vmem:[%s5246_s11 + $0x38] sm:$0xff] }
 0x15e   : > { %3982 = vmatpush3.bf16.msra.mxu0 %v3979_v23  ;;  %3904 = vmatprep.subr.bf16.mxu1 %v3903_v29  ;;  %v2709_v23 = vld [vmem:[%s5246_s11 + $0xc8] sm:$0xff] }
 0x15f   : > { %3984 = vmatprep.subr.bf16.mxu0 %v3983_v30  ;;  %v4019_v25 = vpack.c.bf16 %v2709_v23, %v2708_v19  ;;  %v4159_v19 = vpack.c.bf16 %v2224_v15, %v2223_v14  ;;  %v4047_v23 = vpack.c.bf16 %v1924_v18, %v1923_v17  ;;  %v2728_v15 = vld [vmem:[%s5246_s11 + $0x160] sm:$0xff]  ;;  %v2730_v18 = vld [vmem:[%s5246_s11 + $0x170] sm:$0xff] }
 0x161   : > { %3906 = vmatpush3.bf16.msra.mxu1 %v3903_v29  ;;  %v2712_v29 = vld [vmem:[%s5246_s11 + $0xe0] sm:$0xff] }
 0x162   : > { %3986 = vmatpush3.bf16.msra.mxu0 %v3983_v30  ;;  %4004 = vmatprep.subr.bf16.mxu1 %v4003_v36  ;;  %v2713_v30 = vld [vmem:[%s5246_s11 + $0xe8] sm:$0xff] }
 0x163   : > { %3988 = vmatprep.subr.bf16.mxu0 %v3987_v37  ;;  %v4027_v31 = vpack.c.bf16 %v2713_v30, %v2712_v29 }
 0x164   : > { %3350 = vmatmul.mubr.f32.vlgmr.msra.gmra.mrb[4].mxu1 %v4766_v22  ;;  %v2698_v22 = vld [vmem:[%s5244_s9 + $0x178] sm:$0xff] }
 0x165   : > { %4006 = vmatpush3.bf16.msra.mxu1 %v4003_v36  ;;  %v3999_v46 = vpack.c.bf16 %v2698_v22, %v2697_v45  ;;  %v1917_v36 = vld [vmem:[%s5246_s11] sm:$0xff] }
 0x166   : > { %3990 = vmatpush3.bf16.msra.mxu0 %v3987_v37  ;;  %4008 = vmatprep.subr.bf16.mxu1 %v4007_v7  ;;  %v1918_v37 = vld [vmem:[%s5246_s11 + $0x8] sm:$0xff] }
 0x167   : > { %3992 = vmatprep.subr.bf16.mxu0 %v3991_v39  ;;  %v4035_v38 = vpack.c.bf16 %v1918_v37, %v1917_v36  ;;  %v4167_v37 = vpack.c.bf16 %v2752_v33, %v2751_v32 }
 0x169   : > { %4010 = vmatpush3.bf16.msra.mxu1 %v4007_v7 }
 0x16a   : > { %3994 = vmatpush3.bf16.msra.mxu0 %v3991_v39  ;;  %4012 = vmatprep.subr.bf16.mxu1 %v4011_v10  ;;  %v5028_v39 = vld [vmem:[%s5237_s2] ss:$0 sm:$0xff] }
 0x16b   : > { %3996 = vmatprep.subr.bf16.mxu0 %v3995_v44  ;;  %v789_v45 = vadd.f32 %v4722_v54, %v5028_v39  ;;  %v2214_v54 = vld [vmem:[%s5248_s13 + $0x28] sm:$0xff]  ;;  %v790_v29 = vadd.f32 %v4720_v52, %v5028_v39  ;;  %v1928_v52 = vld [vmem:[%s5246_s11 + $0x58] sm:$0xff] }
 0x16c   : > { %v2754_v39 = vld [vmem:[%s5248_s13 + $0x128] sm:$0xff] }
 0x16d   : > { %4014 = vmatpush3.bf16.msra.mxu1 %v4011_v10  ;;  %v791_v51 = vmax.f32 %v789_v45, 0.0  ;;  %v792_v36 = vmax.f32 %v790_v29, 0.0 }
 0x16e   : > { %3998 = vmatpush3.bf16.msra.mxu0 %v3995_v44  ;;  %4016 = vmatprep.subr.bf16.mxu1 %v4015_v16 }
 0x16f   : > { %4000 = vmatprep.subr.bf16.mxu0 %v3999_v46 }
 0x171   : > { %4018 = vmatpush3.bf16.msra.mxu1 %v4015_v16  ;;  %v4043_v16 = vpack.c.bf16 %v1922_v12, %v1921_v11  ;;  %v2726_v12 = vld [vmem:[%s5246_s11 + $0x150] sm:$0xff] }
 0x172   : > { %4002 = vmatpush3.bf16.msra.mxu0 %v3999_v46  ;;  %4020 = vmatprep.subr.bf16.mxu1 %v4019_v25  ;;  %v2211_v46 = vld [vmem:[%s5248_s13 + $0x10] sm:$0xff] }
 0x173   : > { %4100 = vmatprep.subr.bf16.mxu0 %v4099_v49  ;;  %v4135_v50 = vpack.c.bf16 %v2212_v48, %v2211_v46  ;;  %v2756_v46 = vld [vmem:[%s5248_s13 + $0x138] sm:$0xff]  ;;  %v1931_v48 = vld [vmem:[%s5246_s11 + $0x70] sm:$0xff] }
 0x175   : > { %3455 = vmatmul.mubr.f32.vlgmr.msra.gmra.mrb[4].mxu0 %v1807_v55  ;;  %4022 = vmatpush3.bf16.msra.mxu1 %v4019_v25  ;;  %v2749_v25 = vld [vmem:[%s5248_s13 + $0x100] sm:$0xff] }
 0x176   : > { %4102 = vmatpush3.bf16.msra.mxu0 %v4099_v49  ;;  %4024 = vmatprep.subr.bf16.mxu1 %v4023_v28  ;;  %v4163_v30 = vpack.c.bf16 %v2750_v26, %v2749_v25  ;;  %v2763_v25 = vld [vmem:[%s5248_s13 + $0x170] sm:$0xff]  ;;  %v2764_v26 = vld [vmem:[%s5248_s13 + $0x178] sm:$0xff] }
 0x177   : > { %4104 = vmatprep.subr.bf16.mxu0 %v4103_v53 }
 0x179   : > { %4026 = vmatpush3.bf16.msra.mxu1 %v4023_v28  ;;  %v1926_v28 = vld [vmem:[%s5246_s11 + $0x48] sm:$0xff] }
 0x17a   : > { %4106 = vmatpush3.bf16.msra.mxu0 %v4103_v53  ;;  %4028 = vmatprep.subr.bf16.mxu1 %v4027_v31  ;;  %v2213_v53 = vld [vmem:[%s5248_s13 + $0x20] sm:$0xff] }
 0x17b   : > { %4108 = vmatprep.subr.bf16.mxu0 %v4107_v47  ;;  %v4139_v55 = vpack.c.bf16 %v2214_v54, %v2213_v53  ;;  %v2758_v53 = vld [vmem:[%s5248_s13 + $0x148] sm:$0xff]  ;;  %v2716_v54 = vld [vmem:[%s5246_s11 + $0x100] sm:$0xff] }
 0x17d   : > { %4030 = vmatpush3.bf16.msra.mxu1 %v4027_v31  ;;  %v4051_v31 = vpack.c.bf16 %v1926_v28, %v1925_v27  ;;  %v4191_v27 = vpack.c.bf16 %v2764_v26, %v2763_v25  ;;  %v2732_v28 = vld [vmem:[%s5247_s12] ss:$0 sm:$0xff] }
 0x17e   : > { %4110 = vmatpush3.bf16.msra.mxu0 %v4107_v47  ;;  %4032 = vmatprep.subr.bf16.mxu1 %v4031_v35  ;;  %v4143_v47 = vpack.c.bf16 %v2216_v40, %v2215_v56 }
 0x17f   : > { %4112 = vmatprep.subr.bf16.mxu0 %v4111_v59 }
 0x181   : > { %4034 = vmatpush3.bf16.msra.mxu1 %v4031_v35  ;;  %v1927_v35 = vld [vmem:[%s5246_s11 + $0x50] sm:$0xff] }
 0x182   : > { %4114 = vmatpush3.bf16.msra.mxu0 %v4111_v59  ;;  %4036 = vmatprep.subr.bf16.mxu1 %v4035_v38  ;;  %v2699_v59 = vld [vmem:[%s5245_s10] ss:$0 sm:$0xff] }
 0x183   : > { %4116 = vmatprep.subr.bf16.mxu0 %v4115_v62 }
 0x186   : > { %4118 = vmatpush3.bf16.msra.mxu0 %v4115_v62 }
 0x187   : > { %4120 = vmatprep.subr.bf16.mxu0 %v4119_v1 }
 0x18a   : > { %4122 = vmatpush3.bf16.msra.mxu0 %v4119_v1  ;;  %v2220_v1 = vld [vmem:[%s5248_s13 + $0x58] sm:$0xff] }
 0x18b   : > { %4124 = vmatprep.subr.bf16.mxu0 %v4123_v4  ;;  %v4151_v7 = vpack.c.bf16 %v2220_v1, %v2219_v0  ;;  %v2720_v1 = vld [vmem:[%s5246_s11 + $0x120] sm:$0xff] }
 0x18e   : > { %4126 = vmatpush3.bf16.msra.mxu0 %v4123_v4  ;;  %v1920_v4 = vld [vmem:[%s5246_s11 + $0x18] sm:$0xff] }
 0x18f   : > { %4128 = vmatprep.subr.bf16.mxu0 %v4127_v13  ;;  %v4039_v10 = vpack.c.bf16 %v1920_v4, %v1919_v3 }
 0x192   : > { %4130 = vmatpush3.bf16.msra.mxu0 %v4127_v13  ;;  %v4155_v13 = vpack.c.bf16 %v2222_v9, %v2221_v8  ;;  %v2724_v9 = vld [vmem:[%s5246_s11 + $0x140] sm:$0xff] }
 0x193   : > { %4132 = vmatprep.subr.bf16.mxu0 %v4131_v20 }
 0x237   : > { %v3351_v42 = vpop.f32.mrb[4].mxu1 }
 0x238   : > { %v1614_v43 = vadd.f32 %v3351_v42, %v2666_v41  ;;  %v1595_v44 = vpop.f32.mrb[5].mxu1  ;;  %v1929_v42 = vld [vmem:[%s5246_s11 + $0x60] sm:$0xff] }
 0x239   : > { %v1613_v22 = vadd.f32 %v2666_v41, %v1595_v44  ;;  %v2753_v41 = vld [vmem:[%s5248_s13 + $0x120] sm:$0xff] }
 0x23a   : > { %v1616_v49 = vmax.f32 %v1614_v43, 0.0  ;;  %v1930_v43 = vld [vmem:[%s5246_s11 + $0x68] sm:$0xff]  ;;  %v4171_v44 = vpack.c.bf16 %v2754_v39, %v2753_v41 }
 0x23b   : > { %v1615_v34 = vmax.f32 %v1613_v22, 0.0  ;;  %v4059_v45 = vpack.c.bf16 %v1930_v43, %v1929_v42  ;;  %v2755_v22 = vld [vmem:[%s5248_s13 + $0x130] sm:$0xff] }
 0x23d   : > { %3594 = vmatprep.mubr.f32.mxu0 %v1615_v34  ;;  %v1932_v34 = vld [vmem:[%s5246_s11 + $0x78] sm:$0xff] }
 0x23e   : > { %3595 = vmatmul.mubr.f32.vlgmr.msra.gmra.mrb[6].mxu0 %v1616_v49  ;;  %v4175_v49 = vpack.c.bf16 %v2756_v46, %v2755_v22 }
 0x23f   : > { %4134 = vmatpush3.bf16.msra.mxu0 %v4131_v20  ;;  %3629 = vmatprep.mubr.f32.mxu0 %v791_v51  ;;  %v2757_v51 = vld [vmem:[%s5248_s13 + $0x140] sm:$0xff] }
 0x240   : > { %4136 = vmatprep.subr.bf16.mxu0 %v4135_v50  ;;  %v4179_v56 = vpack.c.bf16 %v2758_v53, %v2757_v51 }
 0x243   : > { %4138 = vmatpush3.bf16.msra.mxu0 %v4135_v50  ;;  %v4063_v50 = vpack.c.bf16 %v1932_v34, %v1931_v48 }
 0x244   : > { %4140 = vmatprep.subr.bf16.mxu0 %v4139_v55 }
 0x247   : > { %4142 = vmatpush3.bf16.msra.mxu0 %v4139_v55  ;;  %v2717_v55 = vld [vmem:[%s5246_s11 + $0x108] sm:$0xff] }
 0x248   : > { %v3456_v60 = vpop.f32.mrb[4].mxu0  ;;  %4144 = vmatprep.subr.bf16.mxu0 %v4143_v47  ;;  %v4067_v40 = vpack.c.bf16 %v2717_v55, %v2716_v54 }
 0x249   : > { %v1910_v62 = vadd.f32 %v3456_v60, %v2699_v59  ;;  %v1891_v63 = vpop.f32.mrb[5].mxu0 }
 0x24a   : > { %v1909_v2 = vadd.f32 %v2699_v59, %v1891_v63  ;;  %v2760_v59 = vld [vmem:[%s5248_s13 + $0x158] sm:$0xff]  ;;  %v2762_v63 = vld [vmem:[%s5248_s13 + $0x168] sm:$0xff] }
 0x24b   : > { %v1912_v5 = vmax.f32 %v1910_v62, 0.0  ;;  %4146 = vmatpush3.bf16.msra.mxu0 %v4143_v47  ;;  %v2718_v47 = vld [vmem:[%s5246_s11 + $0x110] sm:$0xff]  ;;  %v2761_v62 = vld [vmem:[%s5248_s13 + $0x160] sm:$0xff] }
 0x24c   : > { %v1911_v6 = vmax.f32 %v1909_v2, 0.0  ;;  %4148 = vmatprep.subr.bf16.mxu0 %v4147_v61  ;;  %v4071_v60 = vpack.c.bf16 %v2719_v57, %v2718_v47  ;;  %v2721_v2 = vld [vmem:[%s5246_s11 + $0x128] sm:$0xff]  ;;  %v4187_v4 = vpack.c.bf16 %v2762_v63, %v2761_v62 }
 0x24d   : > { %1914 = vst [vmem:[#allocation3 + $0x9] sm:$0xff] %v1912_v5 }
 0x24e   : > { %1913 = vst [vmem:[#allocation3 + $0x1] sm:$0xff] %v1911_v6  ;;  %3489 = vmatprep.mubr.f32.mxu1 %v1911_v6  ;;  %v2722_v6 = vld [vmem:[%s5246_s11 + $0x130] sm:$0xff] }
 0x24f   : > { %4150 = vmatpush3.bf16.msra.mxu0 %v4147_v61  ;;  %3490 = vmatmul.mubr.f32.vlgmr.msra.gmra.mrb[6].mxu1 %v1912_v5  ;;  %v4183_v61 = vpack.c.bf16 %v2760_v59, %v2759_v58  ;;  %v4075_v5 = vpack.c.bf16 %v2721_v2, %v2720_v1 }
 0x250   : > { %4152 = vmatprep.subr.bf16.mxu0 %v4151_v7  ;;  %4038 = vmatpush3.bf16.msra.mxu1 %v4035_v38  ;;  %v4055_v38 = vpack.c.bf16 %v1928_v52, %v1927_v35  ;;  %v2765_v52 = vld [vmem:[%s5249_s14] ss:$0 sm:$0xff] }
 0x251   : > { %4040 = vmatprep.subr.bf16.mxu1 %v4039_v10 }
 0x253   : > { %4154 = vmatpush3.bf16.msra.mxu0 %v4151_v7  ;;  %v2723_v7 = vld [vmem:[%s5246_s11 + $0x138] sm:$0xff] }
 0x254   : > { %4156 = vmatprep.subr.bf16.mxu0 %v4155_v13  ;;  %4042 = vmatpush3.bf16.msra.mxu1 %v4039_v10  ;;  %v4079_v8 = vpack.c.bf16 %v2723_v7, %v2722_v6  ;;  %v2725_v10 = vld [vmem:[%s5246_s11 + $0x148] sm:$0xff] }
 0x255   : > { %v1915_v20 = vld [vmem:[#allocation3] sm:$0xff]  ;;  %4044 = vmatprep.subr.bf16.mxu1 %v4043_v16  ;;  %v1916_v0 = vld [vmem:[#allocation3 + $0x8] sm:$0xff]  ;;  %v4083_v11 = vpack.c.bf16 %v2725_v10, %v2724_v9 }
 0x256   : > { %3524 = vmatprep.mubr.f32.mxu1 %v1915_v20  ;;  %v2102_v3 = vld [vmem:[#allocation3 + $0x2] sm:$0xff] }
 0x257   : > { %4158 = vmatpush3.bf16.msra.mxu0 %v4155_v13  ;;  %v2727_v13 = vld [vmem:[%s5246_s11 + $0x158] sm:$0xff] }
 0x258   : > { %4160 = vmatprep.subr.bf16.mxu0 %v4159_v19  ;;  %4046 = vmatpush3.bf16.msra.mxu1 %v4043_v16  ;;  %v4087_v14 = vpack.c.bf16 %v2727_v13, %v2726_v12  ;;  %v2729_v16 = vld [vmem:[%s5246_s11 + $0x168] sm:$0xff] }
 0x259   : > { %4048 = vmatprep.subr.bf16.mxu1 %v4047_v23  ;;  %v4091_v17 = vpack.c.bf16 %v2729_v16, %v2728_v15 }
 0x25b   : > { %4162 = vmatpush3.bf16.msra.mxu0 %v4159_v19  ;;  %v2731_v19 = vld [vmem:[%s5246_s11 + $0x178] sm:$0xff] }
 0x25c   : > { %4050 = vmatpush3.bf16.msra.mxu1 %v4047_v23  ;;  %4164 = vmatprep.subr.bf16.mxu0 %v4163_v30  ;;  %v4095_v20 = vpack.c.bf16 %v2731_v19, %v2730_v18  ;;  %v2103_v23 = vld [vmem:[#allocation3 + $0xa] sm:$0xff] }
 0x25d   : > { %4052 = vmatprep.subr.bf16.mxu1 %v4051_v31 }
 0x25e   : > { %3630 = vmatmul.mubr.f32.vlgmr.msra.gmra.mrb[6].mxu0 %v792_v36 }
 0x25f   : > { %4166 = vmatpush3.bf16.msra.mxu0 %v4163_v30 }
 0x260   : > { %4054 = vmatpush3.bf16.msra.mxu1 %v4051_v31  ;;  %4168 = vmatprep.subr.bf16.mxu0 %v4167_v37 }
 0x261   : > { %4056 = vmatprep.subr.bf16.mxu1 %v4055_v38 }
 0x263   : > { %4170 = vmatpush3.bf16.msra.mxu0 %v4167_v37 }
 0x264   : > { %4058 = vmatpush3.bf16.msra.mxu1 %v4055_v38  ;;  %4172 = vmatprep.subr.bf16.mxu0 %v4171_v44 }
 0x265   : > { %4060 = vmatprep.subr.bf16.mxu1 %v4059_v45 }
 0x267   : > { %4174 = vmatpush3.bf16.msra.mxu0 %v4171_v44 }
 0x268   : > { %4062 = vmatpush3.bf16.msra.mxu1 %v4059_v45  ;;  %4176 = vmatprep.subr.bf16.mxu0 %v4175_v49 }
 0x269   : > { %4064 = vmatprep.subr.bf16.mxu1 %v4063_v50 }
 0x26b   : > { %4178 = vmatpush3.bf16.msra.mxu0 %v4175_v49 }
 0x26c   : > { %4066 = vmatpush3.bf16.msra.mxu1 %v4063_v50  ;;  %4180 = vmatprep.subr.bf16.mxu0 %v4179_v56 }
 0x26d   : > { %4068 = vmatprep.subr.bf16.mxu1 %v4067_v40 }
 0x26f   : > { %3525 = vmatmul.mubr.f32.vlgmr.msra.gmra.mrb[6].mxu1 %v1916_v0  ;;  %4182 = vmatpush3.bf16.msra.mxu0 %v4179_v56 }
 0x270   : > { %4070 = vmatpush3.bf16.msra.mxu1 %v4067_v40  ;;  %3559 = vmatprep.mubr.f32.mxu1 %v2102_v3 }
 0x271   : > { %4072 = vmatprep.subr.bf16.mxu1 %v4071_v60  ;;  %4184 = vmatprep.subr.bf16.mxu0 %v4183_v61 }
 0x273   : > { %4186 = vmatpush3.bf16.msra.mxu0 %v4183_v61 }
 0x274   : > { %4074 = vmatpush3.bf16.msra.mxu1 %v4071_v60  ;;  %4188 = vmatprep.subr.bf16.mxu0 %v4187_v4 }
 0x275   : > { %4076 = vmatprep.subr.bf16.mxu1 %v4075_v5 }
 0x277   : > { %4190 = vmatpush3.bf16.msra.mxu0 %v4187_v4 }
 0x278   : > { %4078 = vmatpush3.bf16.msra.mxu1 %v4075_v5  ;;  %4192 = vmatprep.subr.bf16.mxu0 %v4191_v27 }
 0x279   : > { %4080 = vmatprep.subr.bf16.mxu1 %v4079_v8 }
 0x27b   : > { %4194 = vmatpush3.bf16.msra.mxu0 %v4191_v27 }
 0x27c   : > { %4082 = vmatpush3.bf16.msra.mxu1 %v4079_v8 }
 0x27d   : > { %4084 = vmatprep.subr.bf16.mxu1 %v4083_v11 }
 0x280   : > { %4086 = vmatpush3.bf16.msra.mxu1 %v4083_v11 }
 0x281   : > { %4088 = vmatprep.subr.bf16.mxu1 %v4087_v14 }
 0x284   : > { %4090 = vmatpush3.bf16.msra.mxu1 %v4087_v14 }
 0x285   : > { %4092 = vmatprep.subr.bf16.mxu1 %v4091_v17 }
 0x288   : > { %4094 = vmatpush3.bf16.msra.mxu1 %v4091_v17 }
 0x289   : > { %4096 = vmatprep.subr.bf16.mxu1 %v4095_v20 }
 0x28c   : > { %4098 = vmatpush3.bf16.msra.mxu1 %v4095_v20 }
 0x28f   : > { %3560 = vmatmul.mubr.f32.vlgmr.msra.gmra.mrb[6].mxu1 %v2103_v23 }
 0x362   : > { %v3561_v29 = vpop.f32.mrb[6].mxu1 }
 0x363   : > { %v2206_v30 = vadd.f32 %v3561_v29, %v2732_v28  ;;  %v2187_v31 = vpop.f32.mrb[7].mxu1 }
 0x364   : > { %v2205_v32 = vadd.f32 %v2732_v28, %v2187_v31 }
 0x365   : > { %v2208_v35 = vmax.f32 %v2206_v30, 0.0 }
 0x366   : > { %v2207_v33 = vmax.f32 %v2205_v32, 0.0 }
 0x368   : > { %3664 = vmatprep.mubr.f32.mxu0 %v2207_v33 }
 0x369   : > { %3665 = vmatmul.mubr.f32.vlgmr.msra.gmra.mrb[6].mxu0 %v2208_v35 }
 0x43c   : > { %v3666_v36 = vpop.f32.mrb[6].mxu0 }
 0x43d   : > { %v2494_v37 = vadd.f32 %v3666_v36, %v2765_v52  ;;  %v2475_v38 = vpop.f32.mrb[7].mxu0 }
 0x43e   : > { %v2493_v41 = vadd.f32 %v2765_v52, %v2475_v38 }
 0x43f   : > { %v2496_v39 = vmax.f32 %v2494_v37, 0.0 }
 0x440   : > { %v2495_v42 = vmax.f32 %v2493_v41, 0.0 }
 0x441   : > { %v2498_v43 = vadd.f32 %v2496_v39, %v4389_v24 }
 0x442   : > { %v2497_v44 = vadd.f32 %v2495_v42, %v4379_v21 }
 0x443   : > { %2500 = vst.msk [vmem:[%s494_s26 + $0x8] sm:$0xff] %vm502_vm1, %v2498_v43 }
 0x444   : > { %2499 = vst.msk [vmem:[%s494_s26] sm:$0xff] %vm502_vm1, %v2497_v44 }
 0x445 PF: > { %s25_s18 = sadd.s32 1, %s4238_s18  }
 0x446   : > { %p22_p4 = scmp.ge.s32.totalorder %s25_s18, 4  }
 0x448   :  { %24 = sbr.rel (!%p22_p4) target bundleno = 1 (0x1), region = 124 }

</bundles_post_ra>
